<compile_context>
chip_gen: v7x
topology: tpu7x:2x2x1
jax: 0.10.0
libtpu: 0.0.40
codegen_flags: <defaults>
</compile_context>

<pallas_src>
import math
import functools

import jax
import jax.numpy as jnp
import numpy as np
from jax.experimental import pallas as pl
from jax.experimental.pallas import tpu as pltpu


# ------------------------- fused all-layers kernel -------------------------

def _localformer_kernel(x_ref, mask_ref,
                        convw_ref, convb_ref,
                        wqkv_ref, bqkv_ref, wo_ref, bo_ref,
                        ln1g_ref, ln1b_ref,
                        wff1_ref, bff1_ref, wff2_ref, bff2_ref,
                        ln2g_ref, ln2b_ref,
                        out_ref,
                        x_sc,
                        *, nhead, eps):
    """One (batch, layer) grid step: Conv1d + TransformerEncoderLayer.

    The running `output` activation lives in VMEM scratch `x_sc` across the
    layer grid axis; HBM is touched only at layer 0 (read) and layer L-1 (write).
    """
    layer = pl.program_id(1)
    num_layers = pl.num_programs(1)

    @pl.when(layer == 0)
    def _():
        x_sc[...] = x_ref[...].astype(jnp.float32)

    x = x_sc[...]                                   # (T, D) f32 == `output`
    T, D = x.shape
    dh = D // nhead
    scale = 1.0 / math.sqrt(dh)

    def mm(a, w):                                   # bf16 MXU matmul, f32 accum
        return jnp.dot(a.astype(jnp.bfloat16), w,
                       preferred_element_type=jnp.float32)

    # ---- Conv1d(D, D, k=3, stride=1, padding=1) ---------------------------
    # token shifts done as in-register sublane shifts (no (T,T) shift matmuls,
    # no (T,3D) lane concat); three lane-dense K=D matmuls.
    zero_row = jnp.zeros((1, D), jnp.float32)
    x_prev = jnp.concatenate([zero_row, x[:-1, :]], axis=0)   # row t <- x[t-1]
    x_next = jnp.concatenate([x[1:, :], zero_row], axis=0)    # row t <- x[t+1]
    conv = (mm(x_prev, convw_ref[0]) + mm(x, convw_ref[1])
            + mm(x_next, convw_ref[2]) + convb_ref[...])

    # ---- TransformerEncoderLayer (post-norm, ReLU) on y = output + conv ----
    y = x + conv
    mask = mask_ref[...].astype(jnp.float32)

    q = mm(y, wqkv_ref[0]) + bqkv_ref[0]            # (T, D) lane-dense
    k = mm(y, wqkv_ref[1]) + bqkv_ref[1]
    v = mm(y, wqkv_ref[2]) + bqkv_ref[2]

    heads = []
    for h in range(nhead):                          # static head loop
        sl = slice(h * dh, (h + 1) * dh)
        qh = q[:, sl].astype(jnp.bfloat16)
        kh = k[:, sl].astype(jnp.bfloat16)
        vh = v[:, sl].astype(jnp.bfloat16)
        s = jax.lax.dot_general(qh, kh, (((1,), (1,)), ((), ())),
                                preferred_element_type=jnp.float32) * scale
        s = s + mask                                # additive src_mask
        s = s - jnp.max(s, axis=-1, keepdims=True)
        p = jnp.exp(s)
        p = p * pl.reciprocal(jnp.sum(p, axis=-1, keepdims=True), approx=True)
        heads.append(jnp.dot(p.astype(jnp.bfloat16), vh,
                             preferred_element_type=jnp.float32))
    o = jnp.concatenate(heads, axis=-1)             # (T, D)
    attn = mm(o, wo_ref[...]) + bo_ref[...]         # single K=D out-proj

    def _ln(z, g, b):
        mu = jnp.mean(z, axis=-1, keepdims=True)
        var = jnp.mean(jnp.square(z - mu), axis=-1, keepdims=True)
        return (z - mu) * jax.lax.rsqrt(var + eps) * g + b

    h1 = _ln(y + attn, ln1g_ref[...], ln1b_ref[...])
    ff = jnp.maximum(mm(h1, wff1_ref[...]) + bff1_ref[...], 0.0)
    ff = mm(ff, wff2_ref[...]) + bff2_ref[...]
    h2 = _ln(h1 + ff, ln2g_ref[...], ln2b_ref[...])

    x_sc[...] = h2                                  # carry `output` to next layer

    @pl.when(layer == num_layers - 1)               # module returns output + out
    def _():
        out_ref[...] = (h2 + conv).astype(out_ref.dtype)


# ------------------------------ wrapper -------------------------------------

def _stack_params(params):
    """Stack per-layer weights on a leading L axis; matrices in bf16, vecs f32."""
    D = params[0]["conv_b"].shape[0]
    F = params[0]["b_ff1"].shape[0]
    bf16 = jnp.bfloat16

    def st(f):
        return jnp.stack([f(p) for p in params], axis=0)

    return dict(
        conv_w=st(lambda p: p["conv_w"]).astype(bf16),                            # (L,3,D,D)
        conv_b=st(lambda p: p["conv_b"].reshape(1, D)),                           # (L,1,D)
        w_qkv=st(lambda p: p["w_qkv"].reshape(D, 3, D).transpose(1, 0, 2)).astype(bf16),  # (L,3,D,D)
        b_qkv=st(lambda p: p["b_qkv"].reshape(3, 1, D)),                          # (L,3,1,D)
        w_o=st(lambda p: p["w_o"]).astype(bf16),                                  # (L,D,D)
        b_o=st(lambda p: p["b_o"].reshape(1, D)),
        ln1_g=st(lambda p: p["ln1_g"].reshape(1, D)),
        ln1_b=st(lambda p: p["ln1_b"].reshape(1, D)),
        w_ff1=st(lambda p: p["w_ff1"]).astype(bf16),                              # (L,D,F)
        b_ff1=st(lambda p: p["b_ff1"].reshape(1, F)),
        w_ff2=st(lambda p: p["w_ff2"]).astype(bf16),                              # (L,F,D)
        b_ff2=st(lambda p: p["b_ff2"].reshape(1, D)),
        ln2_g=st(lambda p: p["ln2_g"].reshape(1, D)),
        ln2_b=st(lambda p: p["ln2_b"].reshape(1, D)),
    )


@functools.partial(jax.jit, static_argnums=(3,))
def localformer_forward(src, mask, params, nhead):
    """Matches LocalformerEncoder.forward: src (T, B, D), mask (T, T)."""
    T, B, D = src.shape
    L = len(params)
    w = _stack_params(params)
    x = jnp.transpose(src, (1, 0, 2))               # (B, T, D)

    weight_order = ("conv_w", "conv_b", "w_qkv", "b_qkv", "w_o", "b_o",
                    "ln1_g", "ln1_b", "w_ff1", "b_ff1", "w_ff2", "b_ff2",
                    "ln2_g", "ln2_b")
    weights = [w[k] for k in weight_order]

    def layer_spec(arr):
        nd = arr.ndim
        return pl.BlockSpec((None,) + arr.shape[1:],
                            lambda b, l, _nd=nd: (l,) + (0,) * (_nd - 1))

    x_spec = pl.BlockSpec((None, T, D), lambda b, l: (b, 0, 0))
    mask_spec = pl.BlockSpec(mask.shape, lambda b, l: (0, 0))
    in_specs = [x_spec, mask_spec] + [layer_spec(a) for a in weights]

    # Explicit VMEM budget: double-buffered per-layer weights + activation
    # tiles + mask + scratch, with headroom (bounded regardless of L).
    per_layer_w = sum(int(a.size) * a.dtype.itemsize // L for a in weights)
    act_bytes = T * D * src.dtype.itemsize
    vmem_limit = int(2 * (per_layer_w + 2 * act_bytes
                          + mask.size * mask.dtype.itemsize)
                     + act_bytes + (8 << 20))
    vmem_limit = min(max(vmem_limit, 16 << 20), 100 << 20)

    out = pl.pallas_call(
        functools.partial(_localformer_kernel, nhead=nhead, eps=1e-5),
        out_shape=jax.ShapeDtypeStruct((B, T, D), src.dtype),
        grid_spec=pltpu.PrefetchScalarGridSpec(
            num_scalar_prefetch=0,
            grid=(B, L),
            in_specs=in_specs,
            out_specs=pl.BlockSpec((None, T, D), lambda b, l: (b, 0, 0)),
            scratch_shapes=[pltpu.VMEM((T, D), jnp.float32)],
        ),
        compiler_params=pltpu.CompilerParams(
            dimension_semantics=("parallel", "arbitrary"),
            vmem_limit_bytes=vmem_limit),
    )(x, mask, *weights)
    return jnp.transpose(out, (1, 0, 2))            # back to (T, B, D)


# ----------------------------- pure-JAX reference --------------------------

def ref_forward(src, mask, params, nhead):
    def lin(x, w, b):
        return x @ w + b

    def ln(x, g, b, eps=1e-5):
        mu = x.mean(-1, keepdims=True)
        var = ((x - mu) ** 2).mean(-1, keepdims=True)
        return (x - mu) / jnp.sqrt(var + eps) * g + b

    def conv(x_btd, w, b):
        T = x_btd.shape[1]
        xp = jnp.pad(x_btd, ((0, 0), (1, 1), (0, 0)))
        return xp[:, 0:T] @ w[0] + xp[:, 1:T + 1] @ w[1] + xp[:, 2:T + 2] @ w[2] + b

    def enc(x, p):
        T, B, D = x.shape
        dh = D // nhead
        x2d = x.reshape(T * B, D)
        qkv = lin(x2d, p["w_qkv"], p["b_qkv"])
        q, k, v = jnp.split(qkv, 3, axis=-1)

        def heads(t):
            return t.reshape(T, B, nhead, dh).transpose(1, 2, 0, 3)  # (B,H,T,dh)

        qh, kh, vh = heads(q), heads(k), heads(v)
        s = jnp.einsum("bhqd,bhkd->bhqk", qh, kh) / math.sqrt(dh) + mask
        att = jax.nn.softmax(s, axis=-1)
        o = jnp.einsum("bhqk,bhkd->bhqd", att, vh)
        o = o.transpose(2, 0, 1, 3).reshape(T * B, D)
        h = ln(x2d + lin(o, p["w_o"], p["b_o"]), p["ln1_g"], p["ln1_b"])
        ff = lin(jnp.maximum(lin(h, p["w_ff1"], p["b_ff1"]), 0.0), p["w_ff2"], p["b_ff2"])
        h = ln(h + ff, p["ln2_g"], p["ln2_b"])
        return h.reshape(T, B, D)

    output = src
    out = src
    for p in params:
        xb = jnp.transpose(output, (1, 0, 2))
        out = jnp.transpose(conv(xb, p["conv_w"], p["conv_b"]), (1, 0, 2))
        output = enc(output + out, p)
    return output + out


# ----------------------------- params / main -------------------------------

def init_params(key, num_layers, d_model, nhead, dim_ff):
    params = []
    scale = 0.1
    for _ in range(num_layers):
        key, *ks = jax.random.split(key, 12)
        ks = iter(ks)

        def nrm(shape):
            return jax.random.normal(next(ks), shape, jnp.float32) * scale

        params.append(dict(
            conv_w=nrm((3, d_model, d_model)),       # conv weight[:, :, k].T per tap
            conv_b=nrm((d_model,)),
            w_qkv=nrm((d_model, 3 * d_model)),       # packed in_proj (pre-transposed)
            b_qkv=nrm((3 * d_model,)),
            w_o=nrm((d_model, d_model)),
            b_o=nrm((d_model,)),
            ln1_g=jnp.ones((d_model,), jnp.float32),
            ln1_b=jnp.zeros((d_model,), jnp.float32),
            w_ff1=nrm((d_model, dim_ff)),
            b_ff1=nrm((dim_ff,)),
            w_ff2=nrm((dim_ff, d_model)),
            b_ff2=nrm((d_model,)),
            ln2_g=jnp.ones((d_model,), jnp.float32),
            ln2_b=jnp.zeros((d_model,), jnp.float32),
        ))
    return params


if __name__ == "__main__":
    T, B, D, H, F, L = 8, 2, 32, 4, 64, 2  # seq, batch, d_model, nhead, dim_ff, layers

    key = jax.random.PRNGKey(0)
    kx, kp = jax.random.split(key)
    src = jax.random.normal(kx, (T, B, D), jnp.float32)
    # additive causal src_mask (T, T): 0 where attendable, -1e9 where masked
    mask = jnp.where(jnp.tril(jnp.ones((T, T), dtype=bool)), 0.0, -1e9).astype(jnp.float32)
    params = init_params(kp, L, D, H, F)

    out = localformer_forward(src, mask, params, H)
    out = jax.block_until_ready(out)
    assert out.shape == (T, B, D)

    ref = ref_forward(src, mask, params, H)
    # bf16 matmul operands (f32 accumulation) + approx EUP reciprocal in-kernel:
    # compare against the f32 reference at ~1e-2-level tolerance.
    np.testing.assert_allclose(np.asarray(out), np.asarray(ref), rtol=3e-2, atol=3e-2)

    print("KERNEL_OK")
</pallas_src>

<mosaic_0001>
module attributes {stable_mosaic.version = 11 : i64} {
  func.func @_localformer_kernel(%arg0: i32, %arg1: i32, %arg2: memref<1x8x32xf32, #tpu.memory_space<vmem>>, %arg3: memref<8x8xf32, #tpu.memory_space<vmem>>, %arg4: memref<1x3x32x32xbf16, #tpu.memory_space<vmem>>, %arg5: memref<1x1x32xf32, #tpu.memory_space<vmem>>, %arg6: memref<1x3x32x32xbf16, #tpu.memory_space<vmem>>, %arg7: memref<1x3x1x32xf32, #tpu.memory_space<vmem>>, %arg8: memref<1x32x32xbf16, #tpu.memory_space<vmem>>, %arg9: memref<1x1x32xf32, #tpu.memory_space<vmem>>, %arg10: memref<1x1x32xf32, #tpu.memory_space<vmem>>, %arg11: memref<1x1x32xf32, #tpu.memory_space<vmem>>, %arg12: memref<1x32x64xbf16, #tpu.memory_space<vmem>>, %arg13: memref<1x1x64xf32, #tpu.memory_space<vmem>>, %arg14: memref<1x64x32xbf16, #tpu.memory_space<vmem>>, %arg15: memref<1x1x32xf32, #tpu.memory_space<vmem>>, %arg16: memref<1x1x32xf32, #tpu.memory_space<vmem>>, %arg17: memref<1x1x32xf32, #tpu.memory_space<vmem>>, %arg18: memref<1x8x32xf32, #tpu.memory_space<vmem>>, %arg19: memref<8x32xf32, #tpu.memory_space<vmem>>) attributes {dimension_semantics = [#tpu.dimension_semantics<parallel>, #tpu.dimension_semantics<arbitrary>], iteration_bounds = array<i64: 2, 2>, scalar_prefetch = 0 : i64, scratch_operands = 1 : i64, tpu.core_type = #tpu.core_type<tc>, window_params = [{transform_indices = @transform_0, window_bounds = array<i64: 1, 8, 32>}, {pipeline_mode = #tpu.pipeline_mode<synchronous>, transform_indices = @transform_1, window_bounds = array<i64: 8, 8>}, {transform_indices = @transform_2, window_bounds = array<i64: 1, 3, 32, 32>}, {transform_indices = @transform_3, window_bounds = array<i64: 1, 1, 32>}, {transform_indices = @transform_4, window_bounds = array<i64: 1, 3, 32, 32>}, {transform_indices = @transform_5, window_bounds = array<i64: 1, 3, 1, 32>}, {transform_indices = @transform_6, window_bounds = array<i64: 1, 32, 32>}, {transform_indices = @transform_7, window_bounds = array<i64: 1, 1, 32>}, {transform_indices = @transform_8, window_bounds = array<i64: 1, 1, 32>}, {transform_indices = @transform_9, window_bounds = array<i64: 1, 1, 32>}, {transform_indices = @transform_10, window_bounds = array<i64: 1, 32, 64>}, {transform_indices = @transform_11, window_bounds = array<i64: 1, 1, 64>}, {transform_indices = @transform_12, window_bounds = array<i64: 1, 64, 32>}, {transform_indices = @transform_13, window_bounds = array<i64: 1, 1, 32>}, {transform_indices = @transform_14, window_bounds = array<i64: 1, 1, 32>}, {transform_indices = @transform_15, window_bounds = array<i64: 1, 1, 32>}, {transform_indices = @transform_16, window_bounds = array<i64: 1, 8, 32>}]} {
    %c0_i32 = arith.constant 0 : i32
    %0 = arith.cmpi eq, %arg1, %c0_i32 : i32
    %1 = arith.extui %0 : i1 to i32
    %c0_i32_0 = arith.constant 0 : i32
    %2 = arith.cmpi ne, %1, %c0_i32_0 : i32
    scf.if %2 {
      %c0_114 = arith.constant 0 : index
      %c0_115 = arith.constant 0 : index
      %c0_116 = arith.constant 0 : index
      %226 = vector.load %arg2[%c0_114, %c0_115, %c0_116] : memref<1x8x32xf32, #tpu.memory_space<vmem>>, vector<1x8x32xf32>
      %227 = vector.shape_cast %226 : vector<1x8x32xf32> to vector<8x32xf32>
      %c0_117 = arith.constant 0 : index
      %c0_118 = arith.constant 0 : index
      %228 = vector.load %arg19[%c0_117, %c0_118] : memref<8x32xf32, #tpu.memory_space<vmem>>, vector<8x32xf32>
      tpu.vector_store %arg19[%c0_117, %c0_118], %227 {strides = array<i32>} : memref<8x32xf32, #tpu.memory_space<vmem>>, vector<8x32xf32>,
    } else {
    }
    %c0 = arith.constant 0 : index
    %c0_1 = arith.constant 0 : index
    %3 = vector.load %arg19[%c0, %c0_1] : memref<8x32xf32, #tpu.memory_space<vmem>>, vector<8x32xf32>
    %cst = arith.constant 0.000000e+00 : f32
    %4 = vector.broadcast %cst : f32 to vector<1x32xf32>
    %5 = vector.extract_strided_slice %3 {offsets = [0, 0], sizes = [7, 32], strides = [1, 1]} : vector<8x32xf32> to vector<7x32xf32>
    %6 = tpu.concatenate %4, %5 in 0 : vector<1x32xf32>, vector<7x32xf32> -> vector<8x32xf32>
    %7 = vector.extract_strided_slice %3 {offsets = [1, 0], sizes = [7, 32], strides = [1, 1]} : vector<8x32xf32> to vector<7x32xf32>
    %8 = tpu.concatenate %7, %4 in 0 : vector<7x32xf32>, vector<1x32xf32> -> vector<8x32xf32>
    %c0_2 = arith.constant 0 : index
    %c0_3 = arith.constant 0 : index
    %c0_4 = arith.constant 0 : index
    %c0_5 = arith.constant 0 : index
    %9 = vector.load %arg4[%c0_2, %c0_3, %c0_4, %c0_5] : memref<1x3x32x32xbf16, #tpu.memory_space<vmem>>, vector<1x1x32x32xbf16>
    %10 = vector.shape_cast %9 : vector<1x1x32x32xbf16> to vector<32x32xbf16>
    %11 = arith.truncf %6 : vector<8x32xf32> to vector<8x32xbf16>
    %cst_6 = arith.constant dense<0.000000e+00> : vector<8x32xf32>
    %12 = tpu.matmul %11, %10, %cst_6 {dimension_numbers = #tpu.dot_dimension_numbers<[1], [0], [0], [1], [0, 0, 1, 1], [], []>} : vector<8x32xbf16>, vector<32x32xbf16>, vector<8x32xf32> -> vector<8x32xf32>
    %c0_7 = arith.constant 0 : index
    %c1 = arith.constant 1 : index
    %c0_8 = arith.constant 0 : index
    %c0_9 = arith.constant 0 : index
    %13 = vector.load %arg4[%c0_7, %c1, %c0_8, %c0_9] : memref<1x3x32x32xbf16, #tpu.memory_space<vmem>>, vector<1x1x32x32xbf16>
    %14 = vector.shape_cast %13 : vector<1x1x32x32xbf16> to vector<32x32xbf16>
    %15 = arith.truncf %3 : vector<8x32xf32> to vector<8x32xbf16>
    %cst_10 = arith.constant dense<0.000000e+00> : vector<8x32xf32>
    %16 = tpu.matmul %15, %14, %cst_10 {dimension_numbers = #tpu.dot_dimension_numbers<[1], [0], [0], [1], [0, 0, 1, 1], [], []>} : vector<8x32xbf16>, vector<32x32xbf16>, vector<8x32xf32> -> vector<8x32xf32>
    %17 = arith.addf %12, %16 : vector<8x32xf32>
    %c0_11 = arith.constant 0 : index
    %c2 = arith.constant 2 : index
    %c0_12 = arith.constant 0 : index
    %c0_13 = arith.constant 0 : index
    %18 = vector.load %arg4[%c0_11, %c2, %c0_12, %c0_13] : memref<1x3x32x32xbf16, #tpu.memory_space<vmem>>, vector<1x1x32x32xbf16>
    %19 = vector.shape_cast %18 : vector<1x1x32x32xbf16> to vector<32x32xbf16>
    %20 = arith.truncf %8 : vector<8x32xf32> to vector<8x32xbf16>
    %cst_14 = arith.constant dense<0.000000e+00> : vector<8x32xf32>
    %21 = tpu.matmul %20, %19, %cst_14 {dimension_numbers = #tpu.dot_dimension_numbers<[1], [0], [0], [1], [0, 0, 1, 1], [], []>} : vector<8x32xbf16>, vector<32x32xbf16>, vector<8x32xf32> -> vector<8x32xf32>
    %22 = arith.addf %17, %21 : vector<8x32xf32>
    %c0_15 = arith.constant 0 : index
    %c0_16 = arith.constant 0 : index
    %c0_17 = arith.constant 0 : index
    %23 = vector.load %arg5[%c0_15, %c0_16, %c0_17] : memref<1x1x32xf32, #tpu.memory_space<vmem>>, vector<1x1x32xf32>
    %24 = vector.shape_cast %23 : vector<1x1x32xf32> to vector<1x32xf32>
    %25 = vector.broadcast %24 : vector<1x32xf32> to vector<8x32xf32>
    %26 = arith.addf %22, %25 : vector<8x32xf32>
    %27 = arith.addf %3, %26 : vector<8x32xf32>
    %c0_18 = arith.constant 0 : index
    %c0_19 = arith.constant 0 : index
    %28 = vector.load %arg3[%c0_18, %c0_19] : memref<8x8xf32, #tpu.memory_space<vmem>>, vector<8x8xf32>
    %c0_20 = arith.constant 0 : index
    %c0_21 = arith.constant 0 : index
    %c0_22 = arith.constant 0 : index
    %c0_23 = arith.constant 0 : index
    %29 = vector.load %arg6[%c0_20, %c0_21, %c0_22, %c0_23] : memref<1x3x32x32xbf16, #tpu.memory_space<vmem>>, vector<1x1x32x32xbf16>
    %30 = vector.shape_cast %29 : vector<1x1x32x32xbf16> to vector<32x32xbf16>
    %31 = arith.truncf %27 : vector<8x32xf32> to vector<8x32xbf16>
    %cst_24 = arith.constant dense<0.000000e+00> : vector<8x32xf32>
    %32 = tpu.matmul %31, %30, %cst_24 {dimension_numbers = #tpu.dot_dimension_numbers<[1], [0], [0], [1], [0, 0, 1, 1], [], []>} : vector<8x32xbf16>, vector<32x32xbf16>, vector<8x32xf32> -> vector<8x32xf32>
    %c0_25 = arith.constant 0 : index
    %c0_26 = arith.constant 0 : index
    %c0_27 = arith.constant 0 : index
    %c0_28 = arith.constant 0 : index
    %33 = vector.load %arg7[%c0_25, %c0_26, %c0_27, %c0_28] : memref<1x3x1x32xf32, #tpu.memory_space<vmem>>, vector<1x1x1x32xf32>
    %34 = vector.shape_cast %33 : vector<1x1x1x32xf32> to vector<1x32xf32>
    %35 = vector.broadcast %34 : vector<1x32xf32> to vector<8x32xf32>
    %36 = arith.addf %32, %35 : vector<8x32xf32>
    %c0_29 = arith.constant 0 : index
    %c1_30 = arith.constant 1 : index
    %c0_31 = arith.constant 0 : index
    %c0_32 = arith.constant 0 : index
    %37 = vector.load %arg6[%c0_29, %c1_30, %c0_31, %c0_32] : memref<1x3x32x32xbf16, #tpu.memory_space<vmem>>, vector<1x1x32x32xbf16>
    %38 = vector.shape_cast %37 : vector<1x1x32x32xbf16> to vector<32x32xbf16>
    %39 = arith.truncf %27 : vector<8x32xf32> to vector<8x32xbf16>
    %cst_33 = arith.constant dense<0.000000e+00> : vector<8x32xf32>
    %40 = tpu.matmul %39, %38, %cst_33 {dimension_numbers = #tpu.dot_dimension_numbers<[1], [0], [0], [1], [0, 0, 1, 1], [], []>} : vector<8x32xbf16>, vector<32x32xbf16>, vector<8x32xf32> -> vector<8x32xf32>
    %c0_34 = arith.constant 0 : index
    %c1_35 = arith.constant 1 : index
    %c0_36 = arith.constant 0 : index
    %c0_37 = arith.constant 0 : index
    %41 = vector.load %arg7[%c0_34, %c1_35, %c0_36, %c0_37] : memref<1x3x1x32xf32, #tpu.memory_space<vmem>>, vector<1x1x1x32xf32>
    %42 = vector.shape_cast %41 : vector<1x1x1x32xf32> to vector<1x32xf32>
    %43 = vector.broadcast %42 : vector<1x32xf32> to vector<8x32xf32>
    %44 = arith.addf %40, %43 : vector<8x32xf32>
    %c0_38 = arith.constant 0 : index
    %c2_39 = arith.constant 2 : index
    %c0_40 = arith.constant 0 : index
    %c0_41 = arith.constant 0 : index
    %45 = vector.load %arg6[%c0_38, %c2_39, %c0_40, %c0_41] : memref<1x3x32x32xbf16, #tpu.memory_space<vmem>>, vector<1x1x32x32xbf16>
    %46 = vector.shape_cast %45 : vector<1x1x32x32xbf16> to vector<32x32xbf16>
    %47 = arith.truncf %27 : vector<8x32xf32> to vector<8x32xbf16>
    %cst_42 = arith.constant dense<0.000000e+00> : vector<8x32xf32>
    %48 = tpu.matmul %47, %46, %cst_42 {dimension_numbers = #tpu.dot_dimension_numbers<[1], [0], [0], [1], [0, 0, 1, 1], [], []>} : vector<8x32xbf16>, vector<32x32xbf16>, vector<8x32xf32> -> vector<8x32xf32>
    %c0_43 = arith.constant 0 : index
    %c2_44 = arith.constant 2 : index
    %c0_45 = arith.constant 0 : index
    %c0_46 = arith.constant 0 : index
    %49 = vector.load %arg7[%c0_43, %c2_44, %c0_45, %c0_46] : memref<1x3x1x32xf32, #tpu.memory_space<vmem>>, vector<1x1x1x32xf32>
    %50 = vector.shape_cast %49 : vector<1x1x1x32xf32> to vector<1x32xf32>
    %51 = vector.broadcast %50 : vector<1x32xf32> to vector<8x32xf32>
    %52 = arith.addf %48, %51 : vector<8x32xf32>
    %53 = vector.extract_strided_slice %36 {offsets = [0, 0], sizes = [8, 8], strides = [1, 1]} : vector<8x32xf32> to vector<8x8xf32>
    %54 = arith.truncf %53 : vector<8x8xf32> to vector<8x8xbf16>
    %55 = vector.extract_strided_slice %44 {offsets = [0, 0], sizes = [8, 8], strides = [1, 1]} : vector<8x32xf32> to vector<8x8xf32>
    %56 = arith.truncf %55 : vector<8x8xf32> to vector<8x8xbf16>
    %57 = vector.extract_strided_slice %52 {offsets = [0, 0], sizes = [8, 8], strides = [1, 1]} : vector<8x32xf32> to vector<8x8xf32>
    %58 = arith.truncf %57 : vector<8x8xf32> to vector<8x8xbf16>
    %cst_47 = arith.constant dense<0.000000e+00> : vector<8x8xf32>
    %59 = tpu.matmul %54, %56, %cst_47 {dimension_numbers = #tpu.dot_dimension_numbers<[1], [1], [0], [0], [0, 0, 1, 0], [], []>} : vector<8x8xbf16>, vector<8x8xbf16>, vector<8x8xf32> -> vector<8x8xf32>
    %cst_48 = arith.constant 0.353553385 : f32
    %60 = vector.broadcast %cst_48 : f32 to vector<8x8xf32>
    %61 = arith.mulf %59, %60 : vector<8x8xf32>
    %62 = arith.addf %61, %28 : vector<8x8xf32>
    %cst_49 = arith.constant dense<0xFF800000> : vector<8xf32>
    %63 = vector.multi_reduction <maximumf>, %62, %cst_49 [1] : vector<8x8xf32> to vector<8xf32>
    %64 = vector.shape_cast %63 : vector<8xf32> to vector<8x1xf32>
    %65 = vector.broadcast %64 : vector<8x1xf32> to vector<8x8xf32>
    %66 = arith.subf %62, %65 : vector<8x8xf32>
    %67 = math.exp %66 : vector<8x8xf32>
    %cst_50 = arith.constant dense<0.000000e+00> : vector<8xf32>
    %68 = vector.multi_reduction <add>, %67, %cst_50 [1] : vector<8x8xf32> to vector<8xf32>
    %69 = vector.shape_cast %68 : vector<8xf32> to vector<8x1xf32>
    %70 = tpu.reciprocal %69 {approx = true} : vector<8x1xf32> -> vector<8x1xf32>
    %71 = vector.broadcast %70 : vector<8x1xf32> to vector<8x8xf32>
    %72 = arith.mulf %67, %71 : vector<8x8xf32>
    %73 = arith.truncf %72 : vector<8x8xf32> to vector<8x8xbf16>
    %cst_51 = arith.constant dense<0.000000e+00> : vector<8x8xf32>
    %74 = tpu.matmul %73, %58, %cst_51 {dimension_numbers = #tpu.dot_dimension_numbers<[1], [0], [0], [1], [0, 0, 1, 1], [], []>} : vector<8x8xbf16>, vector<8x8xbf16>, vector<8x8xf32> -> vector<8x8xf32>
    %75 = vector.extract_strided_slice %36 {offsets = [0, 8], sizes = [8, 8], strides = [1, 1]} : vector<8x32xf32> to vector<8x8xf32>
    %76 = arith.truncf %75 : vector<8x8xf32> to vector<8x8xbf16>
    %77 = vector.extract_strided_slice %44 {offsets = [0, 8], sizes = [8, 8], strides = [1, 1]} : vector<8x32xf32> to vector<8x8xf32>
    %78 = arith.truncf %77 : vector<8x8xf32> to vector<8x8xbf16>
    %79 = vector.extract_strided_slice %52 {offsets = [0, 8], sizes = [8, 8], strides = [1, 1]} : vector<8x32xf32> to vector<8x8xf32>
    %80 = arith.truncf %79 : vector<8x8xf32> to vector<8x8xbf16>
    %cst_52 = arith.constant dense<0.000000e+00> : vector<8x8xf32>
    %81 = tpu.matmul %76, %78, %cst_52 {dimension_numbers = #tpu.dot_dimension_numbers<[1], [1], [0], [0], [0, 0, 1, 0], [], []>} : vector<8x8xbf16>, vector<8x8xbf16>, vector<8x8xf32> -> vector<8x8xf32>
    %cst_53 = arith.constant 0.353553385 : f32
    %82 = vector.broadcast %cst_53 : f32 to vector<8x8xf32>
    %83 = arith.mulf %81, %82 : vector<8x8xf32>
    %84 = arith.addf %83, %28 : vector<8x8xf32>
    %cst_54 = arith.constant dense<0xFF800000> : vector<8xf32>
    %85 = vector.multi_reduction <maximumf>, %84, %cst_54 [1] : vector<8x8xf32> to vector<8xf32>
    %86 = vector.shape_cast %85 : vector<8xf32> to vector<8x1xf32>
    %87 = vector.broadcast %86 : vector<8x1xf32> to vector<8x8xf32>
    %88 = arith.subf %84, %87 : vector<8x8xf32>
    %89 = math.exp %88 : vector<8x8xf32>
    %cst_55 = arith.constant dense<0.000000e+00> : vector<8xf32>
    %90 = vector.multi_reduction <add>, %89, %cst_55 [1] : vector<8x8xf32> to vector<8xf32>
    %91 = vector.shape_cast %90 : vector<8xf32> to vector<8x1xf32>
    %92 = tpu.reciprocal %91 {approx = true} : vector<8x1xf32> -> vector<8x1xf32>
    %93 = vector.broadcast %92 : vector<8x1xf32> to vector<8x8xf32>
    %94 = arith.mulf %89, %93 : vector<8x8xf32>
    %95 = arith.truncf %94 : vector<8x8xf32> to vector<8x8xbf16>
    %cst_56 = arith.constant dense<0.000000e+00> : vector<8x8xf32>
    %96 = tpu.matmul %95, %80, %cst_56 {dimension_numbers = #tpu.dot_dimension_numbers<[1], [0], [0], [1], [0, 0, 1, 1], [], []>} : vector<8x8xbf16>, vector<8x8xbf16>, vector<8x8xf32> -> vector<8x8xf32>
    %97 = vector.extract_strided_slice %36 {offsets = [0, 16], sizes = [8, 8], strides = [1, 1]} : vector<8x32xf32> to vector<8x8xf32>
    %98 = arith.truncf %97 : vector<8x8xf32> to vector<8x8xbf16>
    %99 = vector.extract_strided_slice %44 {offsets = [0, 16], sizes = [8, 8], strides = [1, 1]} : vector<8x32xf32> to vector<8x8xf32>
    %100 = arith.truncf %99 : vector<8x8xf32> to vector<8x8xbf16>
    %101 = vector.extract_strided_slice %52 {offsets = [0, 16], sizes = [8, 8], strides = [1, 1]} : vector<8x32xf32> to vector<8x8xf32>
    %102 = arith.truncf %101 : vector<8x8xf32> to vector<8x8xbf16>
    %cst_57 = arith.constant dense<0.000000e+00> : vector<8x8xf32>
    %103 = tpu.matmul %98, %100, %cst_57 {dimension_numbers = #tpu.dot_dimension_numbers<[1], [1], [0], [0], [0, 0, 1, 0], [], []>} : vector<8x8xbf16>, vector<8x8xbf16>, vector<8x8xf32> -> vector<8x8xf32>
    %cst_58 = arith.constant 0.353553385 : f32
    %104 = vector.broadcast %cst_58 : f32 to vector<8x8xf32>
    %105 = arith.mulf %103, %104 : vector<8x8xf32>
    %106 = arith.addf %105, %28 : vector<8x8xf32>
    %cst_59 = arith.constant dense<0xFF800000> : vector<8xf32>
    %107 = vector.multi_reduction <maximumf>, %106, %cst_59 [1] : vector<8x8xf32> to vector<8xf32>
    %108 = vector.shape_cast %107 : vector<8xf32> to vector<8x1xf32>
    %109 = vector.broadcast %108 : vector<8x1xf32> to vector<8x8xf32>
    %110 = arith.subf %106, %109 : vector<8x8xf32>
    %111 = math.exp %110 : vector<8x8xf32>
    %cst_60 = arith.constant dense<0.000000e+00> : vector<8xf32>
    %112 = vector.multi_reduction <add>, %111, %cst_60 [1] : vector<8x8xf32> to vector<8xf32>
    %113 = vector.shape_cast %112 : vector<8xf32> to vector<8x1xf32>
    %114 = tpu.reciprocal %113 {approx = true} : vector<8x1xf32> -> vector<8x1xf32>
    %115 = vector.broadcast %114 : vector<8x1xf32> to vector<8x8xf32>
    %116 = arith.mulf %111, %115 : vector<8x8xf32>
    %117 = arith.truncf %116 : vector<8x8xf32> to vector<8x8xbf16>
    %cst_61 = arith.constant dense<0.000000e+00> : vector<8x8xf32>
    %118 = tpu.matmul %117, %102, %cst_61 {dimension_numbers = #tpu.dot_dimension_numbers<[1], [0], [0], [1], [0, 0, 1, 1], [], []>} : vector<8x8xbf16>, vector<8x8xbf16>, vector<8x8xf32> -> vector<8x8xf32>
    %119 = vector.extract_strided_slice %36 {offsets = [0, 24], sizes = [8, 8], strides = [1, 1]} : vector<8x32xf32> to vector<8x8xf32>
    %120 = arith.truncf %119 : vector<8x8xf32> to vector<8x8xbf16>
    %121 = vector.extract_strided_slice %44 {offsets = [0, 24], sizes = [8, 8], strides = [1, 1]} : vector<8x32xf32> to vector<8x8xf32>
    %122 = arith.truncf %121 : vector<8x8xf32> to vector<8x8xbf16>
    %123 = vector.extract_strided_slice %52 {offsets = [0, 24], sizes = [8, 8], strides = [1, 1]} : vector<8x32xf32> to vector<8x8xf32>
    %124 = arith.truncf %123 : vector<8x8xf32> to vector<8x8xbf16>
    %cst_62 = arith.constant dense<0.000000e+00> : vector<8x8xf32>
    %125 = tpu.matmul %120, %122, %cst_62 {dimension_numbers = #tpu.dot_dimension_numbers<[1], [1], [0], [0], [0, 0, 1, 0], [], []>} : vector<8x8xbf16>, vector<8x8xbf16>, vector<8x8xf32> -> vector<8x8xf32>
    %cst_63 = arith.constant 0.353553385 : f32
    %126 = vector.broadcast %cst_63 : f32 to vector<8x8xf32>
    %127 = arith.mulf %125, %126 : vector<8x8xf32>
    %128 = arith.addf %127, %28 : vector<8x8xf32>
    %cst_64 = arith.constant dense<0xFF800000> : vector<8xf32>
    %129 = vector.multi_reduction <maximumf>, %128, %cst_64 [1] : vector<8x8xf32> to vector<8xf32>
    %130 = vector.shape_cast %129 : vector<8xf32> to vector<8x1xf32>
    %131 = vector.broadcast %130 : vector<8x1xf32> to vector<8x8xf32>
    %132 = arith.subf %128, %131 : vector<8x8xf32>
    %133 = math.exp %132 : vector<8x8xf32>
    %cst_65 = arith.constant dense<0.000000e+00> : vector<8xf32>
    %134 = vector.multi_reduction <add>, %133, %cst_65 [1] : vector<8x8xf32> to vector<8xf32>
    %135 = vector.shape_cast %134 : vector<8xf32> to vector<8x1xf32>
    %136 = tpu.reciprocal %135 {approx = true} : vector<8x1xf32> -> vector<8x1xf32>
    %137 = vector.broadcast %136 : vector<8x1xf32> to vector<8x8xf32>
    %138 = arith.mulf %133, %137 : vector<8x8xf32>
    %139 = arith.truncf %138 : vector<8x8xf32> to vector<8x8xbf16>
    %cst_66 = arith.constant dense<0.000000e+00> : vector<8x8xf32>
    %140 = tpu.matmul %139, %124, %cst_66 {dimension_numbers = #tpu.dot_dimension_numbers<[1], [0], [0], [1], [0, 0, 1, 1], [], []>} : vector<8x8xbf16>, vector<8x8xbf16>, vector<8x8xf32> -> vector<8x8xf32>
    %141 = tpu.concatenate %74, %96, %118, %140 in 1 : vector<8x8xf32>, vector<8x8xf32>, vector<8x8xf32>, vector<8x8xf32> -> vector<8x32xf32>
    %c0_67 = arith.constant 0 : index
    %c0_68 = arith.constant 0 : index
    %c0_69 = arith.constant 0 : index
    %142 = vector.load %arg8[%c0_67, %c0_68, %c0_69] : memref<1x32x32xbf16, #tpu.memory_space<vmem>>, vector<1x32x32xbf16>
    %143 = vector.shape_cast %142 : vector<1x32x32xbf16> to vector<32x32xbf16>
    %144 = arith.truncf %141 : vector<8x32xf32> to vector<8x32xbf16>
    %cst_70 = arith.constant dense<0.000000e+00> : vector<8x32xf32>
    %145 = tpu.matmul %144, %143, %cst_70 {dimension_numbers = #tpu.dot_dimension_numbers<[1], [0], [0], [1], [0, 0, 1, 1], [], []>} : vector<8x32xbf16>, vector<32x32xbf16>, vector<8x32xf32> -> vector<8x32xf32>
    %c0_71 = arith.constant 0 : index
    %c0_72 = arith.constant 0 : index
    %c0_73 = arith.constant 0 : index
    %146 = vector.load %arg9[%c0_71, %c0_72, %c0_73] : memref<1x1x32xf32, #tpu.memory_space<vmem>>, vector<1x1x32xf32>
    %147 = vector.shape_cast %146 : vector<1x1x32xf32> to vector<1x32xf32>
    %148 = vector.broadcast %147 : vector<1x32xf32> to vector<8x32xf32>
    %149 = arith.addf %145, %148 : vector<8x32xf32>
    %150 = arith.addf %27, %149 : vector<8x32xf32>
    %c0_74 = arith.constant 0 : index
    %c0_75 = arith.constant 0 : index
    %c0_76 = arith.constant 0 : index
    %151 = vector.load %arg10[%c0_74, %c0_75, %c0_76] : memref<1x1x32xf32, #tpu.memory_space<vmem>>, vector<1x1x32xf32>
    %152 = vector.shape_cast %151 : vector<1x1x32xf32> to vector<1x32xf32>
    %c0_77 = arith.constant 0 : index
    %c0_78 = arith.constant 0 : index
    %c0_79 = arith.constant 0 : index
    %153 = vector.load %arg11[%c0_77, %c0_78, %c0_79] : memref<1x1x32xf32, #tpu.memory_space<vmem>>, vector<1x1x32xf32>
    %154 = vector.shape_cast %153 : vector<1x1x32xf32> to vector<1x32xf32>
    %cst_80 = arith.constant dense<0.000000e+00> : vector<8xf32>
    %155 = vector.multi_reduction <add>, %150, %cst_80 [1] : vector<8x32xf32> to vector<8xf32>
    %156 = vector.shape_cast %155 : vector<8xf32> to vector<8x1xf32>
    %cst_81 = arith.constant 3.200000e+01 : f32
    %157 = vector.broadcast %cst_81 : f32 to vector<8x1xf32>
    %158 = arith.divf %156, %157 : vector<8x1xf32>
    %159 = vector.broadcast %158 : vector<8x1xf32> to vector<8x32xf32>
    %160 = arith.subf %150, %159 : vector<8x32xf32>
    %161 = arith.mulf %160, %160 : vector<8x32xf32>
    %cst_82 = arith.constant dense<0.000000e+00> : vector<8xf32>
    %162 = vector.multi_reduction <add>, %161, %cst_82 [1] : vector<8x32xf32> to vector<8xf32>
    %163 = vector.shape_cast %162 : vector<8xf32> to vector<8x1xf32>
    %cst_83 = arith.constant 3.200000e+01 : f32
    %164 = vector.broadcast %cst_83 : f32 to vector<8x1xf32>
    %165 = arith.divf %163, %164 : vector<8x1xf32>
    %166 = vector.broadcast %158 : vector<8x1xf32> to vector<8x32xf32>
    %167 = arith.subf %150, %166 : vector<8x32xf32>
    %cst_84 = arith.constant 9.99999974E-6 : f32
    %168 = vector.broadcast %cst_84 : f32 to vector<8x1xf32>
    %169 = arith.addf %165, %168 : vector<8x1xf32>
    %170 = math.rsqrt %169 : vector<8x1xf32>
    %171 = vector.broadcast %170 : vector<8x1xf32> to vector<8x32xf32>
    %172 = arith.mulf %167, %171 : vector<8x32xf32>
    %173 = vector.broadcast %152 : vector<1x32xf32> to vector<8x32xf32>
    %174 = arith.mulf %172, %173 : vector<8x32xf32>
    %175 = vector.broadcast %154 : vector<1x32xf32> to vector<8x32xf32>
    %176 = arith.addf %174, %175 : vector<8x32xf32>
    %c0_85 = arith.constant 0 : index
    %c0_86 = arith.constant 0 : index
    %c0_87 = arith.constant 0 : index
    %177 = vector.load %arg12[%c0_85, %c0_86, %c0_87] : memref<1x32x64xbf16, #tpu.memory_space<vmem>>, vector<1x32x64xbf16>
    %178 = vector.shape_cast %177 : vector<1x32x64xbf16> to vector<32x64xbf16>
    %179 = arith.truncf %176 : vector<8x32xf32> to vector<8x32xbf16>
    %cst_88 = arith.constant dense<0.000000e+00> : vector<8x64xf32>
    %180 = tpu.matmul %179, %178, %cst_88 {dimension_numbers = #tpu.dot_dimension_numbers<[1], [0], [0], [1], [0, 0, 1, 1], [], []>} : vector<8x32xbf16>, vector<32x64xbf16>, vector<8x64xf32> -> vector<8x64xf32>
    %c0_89 = arith.constant 0 : index
    %c0_90 = arith.constant 0 : index
    %c0_91 = arith.constant 0 : index
    %181 = vector.load %arg13[%c0_89, %c0_90, %c0_91] : memref<1x1x64xf32, #tpu.memory_space<vmem>>, vector<1x1x64xf32>
    %182 = vector.shape_cast %181 : vector<1x1x64xf32> to vector<1x64xf32>
    %183 = vector.broadcast %182 : vector<1x64xf32> to vector<8x64xf32>
    %184 = arith.addf %180, %183 : vector<8x64xf32>
    %cst_92 = arith.constant 0.000000e+00 : f32
    %185 = vector.broadcast %cst_92 : f32 to vector<8x64xf32>
    %186 = arith.maximumf %184, %185 : vector<8x64xf32>
    %c0_93 = arith.constant 0 : index
    %c0_94 = arith.constant 0 : index
    %c0_95 = arith.constant 0 : index
    %187 = vector.load %arg14[%c0_93, %c0_94, %c0_95] : memref<1x64x32xbf16, #tpu.memory_space<vmem>>, vector<1x64x32xbf16>
    %188 = vector.shape_cast %187 : vector<1x64x32xbf16> to vector<64x32xbf16>
    %189 = arith.truncf %186 : vector<8x64xf32> to vector<8x64xbf16>
    %cst_96 = arith.constant dense<0.000000e+00> : vector<8x32xf32>
    %190 = tpu.matmul %189, %188, %cst_96 {dimension_numbers = #tpu.dot_dimension_numbers<[1], [0], [0], [1], [0, 0, 1, 1], [], []>} : vector<8x64xbf16>, vector<64x32xbf16>, vector<8x32xf32> -> vector<8x32xf32>
    %c0_97 = arith.constant 0 : index
    %c0_98 = arith.constant 0 : index
    %c0_99 = arith.constant 0 : index
    %191 = vector.load %arg15[%c0_97, %c0_98, %c0_99] : memref<1x1x32xf32, #tpu.memory_space<vmem>>, vector<1x1x32xf32>
    %192 = vector.shape_cast %191 : vector<1x1x32xf32> to vector<1x32xf32>
    %193 = vector.broadcast %192 : vector<1x32xf32> to vector<8x32xf32>
    %194 = arith.addf %190, %193 : vector<8x32xf32>
    %195 = arith.addf %176, %194 : vector<8x32xf32>
    %c0_100 = arith.constant 0 : index
    %c0_101 = arith.constant 0 : index
    %c0_102 = arith.constant 0 : index
    %196 = vector.load %arg16[%c0_100, %c0_101, %c0_102] : memref<1x1x32xf32, #tpu.memory_space<vmem>>, vector<1x1x32xf32>
    %197 = vector.shape_cast %196 : vector<1x1x32xf32> to vector<1x32xf32>
    %c0_103 = arith.constant 0 : index
    %c0_104 = arith.constant 0 : index
    %c0_105 = arith.constant 0 : index
    %198 = vector.load %arg17[%c0_103, %c0_104, %c0_105] : memref<1x1x32xf32, #tpu.memory_space<vmem>>, vector<1x1x32xf32>
    %199 = vector.shape_cast %198 : vector<1x1x32xf32> to vector<1x32xf32>
    %cst_106 = arith.constant dense<0.000000e+00> : vector<8xf32>
    %200 = vector.multi_reduction <add>, %195, %cst_106 [1] : vector<8x32xf32> to vector<8xf32>
    %201 = vector.shape_cast %200 : vector<8xf32> to vector<8x1xf32>
    %cst_107 = arith.constant 3.200000e+01 : f32
    %202 = vector.broadcast %cst_107 : f32 to vector<8x1xf32>
    %203 = arith.divf %201, %202 : vector<8x1xf32>
    %204 = vector.broadcast %203 : vector<8x1xf32> to vector<8x32xf32>
    %205 = arith.subf %195, %204 : vector<8x32xf32>
    %206 = arith.mulf %205, %205 : vector<8x32xf32>
    %cst_108 = arith.constant dense<0.000000e+00> : vector<8xf32>
    %207 = vector.multi_reduction <add>, %206, %cst_108 [1] : vector<8x32xf32> to vector<8xf32>
    %208 = vector.shape_cast %207 : vector<8xf32> to vector<8x1xf32>
    %cst_109 = arith.constant 3.200000e+01 : f32
    %209 = vector.broadcast %cst_109 : f32 to vector<8x1xf32>
    %210 = arith.divf %208, %209 : vector<8x1xf32>
    %211 = vector.broadcast %203 : vector<8x1xf32> to vector<8x32xf32>
    %212 = arith.subf %195, %211 : vector<8x32xf32>
    %cst_110 = arith.constant 9.99999974E-6 : f32
    %213 = vector.broadcast %cst_110 : f32 to vector<8x1xf32>
    %214 = arith.addf %210, %213 : vector<8x1xf32>
    %215 = math.rsqrt %214 : vector<8x1xf32>
    %216 = vector.broadcast %215 : vector<8x1xf32> to vector<8x32xf32>
    %217 = arith.mulf %212, %216 : vector<8x32xf32>
    %218 = vector.broadcast %197 : vector<1x32xf32> to vector<8x32xf32>
    %219 = arith.mulf %217, %218 : vector<8x32xf32>
    %220 = vector.broadcast %199 : vector<1x32xf32> to vector<8x32xf32>
    %221 = arith.addf %219, %220 : vector<8x32xf32>
    %c0_111 = arith.constant 0 : index
    %c0_112 = arith.constant 0 : index
    %222 = vector.load %arg19[%c0_111, %c0_112] : memref<8x32xf32, #tpu.memory_space<vmem>>, vector<8x32xf32>
    tpu.vector_store %arg19[%c0_111, %c0_112], %221 {strides = array<i32>} : memref<8x32xf32, #tpu.memory_space<vmem>>, vector<8x32xf32>,
    %c1_i32 = arith.constant 1 : i32
    %223 = arith.cmpi eq, %arg1, %c1_i32 : i32
    %224 = arith.extui %223 : i1 to i32
    %c0_i32_113 = arith.constant 0 : i32
    %225 = arith.cmpi ne, %224, %c0_i32_113 : i32
    scf.if %225 {
      %226 = arith.addf %221, %26 : vector<8x32xf32>
      %c0_114 = arith.constant 0 : index
      %c0_115 = arith.constant 0 : index
      %c0_116 = arith.constant 0 : index
      %227 = vector.load %arg18[%c0_114, %c0_115, %c0_116] : memref<1x8x32xf32, #tpu.memory_space<vmem>>, vector<1x8x32xf32>
      %228 = vector.shape_cast %227 : vector<1x8x32xf32> to vector<8x32xf32>
      %229 = vector.shape_cast %226 : vector<8x32xf32> to vector<1x8x32xf32>
      tpu.vector_store %arg18[%c0_114, %c0_115, %c0_116], %229 {strides = array<i32>} : memref<1x8x32xf32, #tpu.memory_space<vmem>>, vector<1x8x32xf32>,
    } else {
    }
    return
  }
  func.func @transform_0(%arg0: i32, %arg1: i32) -> (i32, i32, i32) {
    %c0_i32 = arith.constant 0 : i32
    %c0_i32_0 = arith.constant 0 : i32
    %c0_i32_1 = arith.constant 0 : i32
    return %arg0, %c0_i32, %c0_i32_0 : i32, i32, i32
  }
  func.func @transform_1(%arg0: i32, %arg1: i32) -> (i32, i32) {
    %c0_i32 = arith.constant 0 : i32
    %c0_i32_0 = arith.constant 0 : i32
    %c0_i32_1 = arith.constant 0 : i32
    return %c0_i32, %c0_i32_0 : i32, i32
  }
  func.func @transform_2(%arg0: i32, %arg1: i32) -> (i32, i32, i32, i32) {
    %c0_i32 = arith.constant 0 : i32
    %c0_i32_0 = arith.constant 0 : i32
    %c0_i32_1 = arith.constant 0 : i32
    %c0_i32_2 = arith.constant 0 : i32
    return %arg1, %c0_i32, %c0_i32_0, %c0_i32_1 : i32, i32, i32, i32
  }
  func.func @transform_3(%arg0: i32, %arg1: i32) -> (i32, i32, i32) {
    %c0_i32 = arith.constant 0 : i32
    %c0_i32_0 = arith.constant 0 : i32
    %c0_i32_1 = arith.constant 0 : i32
    return %arg1, %c0_i32, %c0_i32_0 : i32, i32, i32
  }
  func.func @transform_4(%arg0: i32, %arg1: i32) -> (i32, i32, i32, i32) {
    %c0_i32 = arith.constant 0 : i32
    %c0_i32_0 = arith.constant 0 : i32
    %c0_i32_1 = arith.constant 0 : i32
    %c0_i32_2 = arith.constant 0 : i32
    return %arg1, %c0_i32, %c0_i32_0, %c0_i32_1 : i32, i32, i32, i32
  }
  func.func @transform_5(%arg0: i32, %arg1: i32) -> (i32, i32, i32, i32) {
    %c0_i32 = arith.constant 0 : i32
    %c0_i32_0 = arith.constant 0 : i32
    %c0_i32_1 = arith.constant 0 : i32
    %c0_i32_2 = arith.constant 0 : i32
    return %arg1, %c0_i32, %c0_i32_0, %c0_i32_1 : i32, i32, i32, i32
  }
  func.func @transform_6(%arg0: i32, %arg1: i32) -> (i32, i32, i32) {
    %c0_i32 = arith.constant 0 : i32
    %c0_i32_0 = arith.constant 0 : i32
    %c0_i32_1 = arith.constant 0 : i32
    return %arg1, %c0_i32, %c0_i32_0 : i32, i32, i32
  }
  func.func @transform_7(%arg0: i32, %arg1: i32) -> (i32, i32, i32) {
    %c0_i32 = arith.constant 0 : i32
    %c0_i32_0 = arith.constant 0 : i32
    %c0_i32_1 = arith.constant 0 : i32
    return %arg1, %c0_i32, %c0_i32_0 : i32, i32, i32
  }
  func.func @transform_8(%arg0: i32, %arg1: i32) -> (i32, i32, i32) {
    %c0_i32 = arith.constant 0 : i32
    %c0_i32_0 = arith.constant 0 : i32
    %c0_i32_1 = arith.constant 0 : i32
    return %arg1, %c0_i32, %c0_i32_0 : i32, i32, i32
  }
  func.func @transform_9(%arg0: i32, %arg1: i32) -> (i32, i32, i32) {
    %c0_i32 = arith.constant 0 : i32
    %c0_i32_0 = arith.constant 0 : i32
    %c0_i32_1 = arith.constant 0 : i32
    return %arg1, %c0_i32, %c0_i32_0 : i32, i32, i32
  }
  func.func @transform_10(%arg0: i32, %arg1: i32) -> (i32, i32, i32) {
    %c0_i32 = arith.constant 0 : i32
    %c0_i32_0 = arith.constant 0 : i32
    %c0_i32_1 = arith.constant 0 : i32
    return %arg1, %c0_i32, %c0_i32_0 : i32, i32, i32
  }
  func.func @transform_11(%arg0: i32, %arg1: i32) -> (i32, i32, i32) {
    %c0_i32 = arith.constant 0 : i32
    %c0_i32_0 = arith.constant 0 : i32
    %c0_i32_1 = arith.constant 0 : i32
    return %arg1, %c0_i32, %c0_i32_0 : i32, i32, i32
  }
  func.func @transform_12(%arg0: i32, %arg1: i32) -> (i32, i32, i32) {
    %c0_i32 = arith.constant 0 : i32
    %c0_i32_0 = arith.constant 0 : i32
    %c0_i32_1 = arith.constant 0 : i32
    return %arg1, %c0_i32, %c0_i32_0 : i32, i32, i32
  }
  func.func @transform_13(%arg0: i32, %arg1: i32) -> (i32, i32, i32) {
    %c0_i32 = arith.constant 0 : i32
    %c0_i32_0 = arith.constant 0 : i32
    %c0_i32_1 = arith.constant 0 : i32
    return %arg1, %c0_i32, %c0_i32_0 : i32, i32, i32
  }
  func.func @transform_14(%arg0: i32, %arg1: i32) -> (i32, i32, i32) {
    %c0_i32 = arith.constant 0 : i32
    %c0_i32_0 = arith.constant 0 : i32
    %c0_i32_1 = arith.constant 0 : i32
    return %arg1, %c0_i32, %c0_i32_0 : i32, i32, i32
  }
  func.func @transform_15(%arg0: i32, %arg1: i32) -> (i32, i32, i32) {
    %c0_i32 = arith.constant 0 : i32
    %c0_i32_0 = arith.constant 0 : i32
    %c0_i32_1 = arith.constant 0 : i32
    return %arg1, %c0_i32, %c0_i32_0 : i32, i32, i32
  }
  func.func @transform_16(%arg0: i32, %arg1: i32) -> (i32, i32, i32) {
    %c0_i32 = arith.constant 0 : i32
    %c0_i32_0 = arith.constant 0 : i32
    %c0_i32_1 = arith.constant 0 : i32
    return %arg0, %c0_i32, %c0_i32_0 : i32, i32, i32
  }
}

</mosaic_0001>

<bundles_post_ra>
// kernel: localformer_forward.1
= control target key start
LH: loop header
LB: loop body
LE: loop exit
PB: predicated region body
PF: predicated region fallthrough
CT: control target
= control target key end

     0   :  { %s2609_s21 = smov 0   ;;  %s2611_s22 = smov 0   ;;  %s2928_s0 = inlined_call_operand.vmem [shape: f32[2,8,32], index: 0, kind: input, shape index: {}]   ;;  %s2929_s1 = inlined_call_operand.vmem [shape: f32[8,8], index: 1, kind: input, shape index: {}]   ;;  %s2930_s2 = inlined_call_operand.vmem [shape: bf16[2,3,32,32], index: 2, kind: input, shape index: {}]   ;;  %s2931_s3 = inlined_call_operand.vmem [shape: f32[2,1,32], index: 3, kind: input, shape index: {}]   ;;  %s2932_s4 = inlined_call_operand.vmem [shape: bf16[2,3,32,32], index: 4, kind: input, shape index: {}]   ;;  %s2933_s5 = inlined_call_operand.vmem [shape: f32[2,3,1,32], index: 5, kind: input, shape index: {}]   ;;  %s2934_s6 = inlined_call_operand.vmem [shape: bf16[2,32,32], index: 6, kind: input, shape index: {}]   ;;  %s2935_s7 = inlined_call_operand.vmem [shape: f32[2,1,32], index: 7, kind: input, shape index: {}]   ;;  %s2936_s8 = inlined_call_operand.vmem [shape: f32[2,1,32], index: 8, kind: input, shape index: {}]   ;;  %s2937_s9 = inlined_call_operand.vmem [shape: f32[2,1,32], index: 9, kind: input, shape index: {}]   ;;  %s2938_s10 = inlined_call_operand.vmem [shape: bf16[2,32,64], index: 10, kind: input, shape index: {}]   ;;  %s2939_s11 = inlined_call_operand.vmem [shape: f32[2,1,64], index: 11, kind: input, shape index: {}]   ;;  %s2940_s12 = inlined_call_operand.vmem [shape: bf16[2,64,32], index: 12, kind: input, shape index: {}]   ;;  %s2941_s13 = inlined_call_operand.vmem [shape: f32[2,1,32], index: 13, kind: input, shape index: {}]   ;;  %s2942_s14 = inlined_call_operand.vmem [shape: f32[2,1,32], index: 14, kind: input, shape index: {}]   ;;  %s2943_s15 = inlined_call_operand.vmem [shape: f32[2,1,32], index: 15, kind: input, shape index: {}]   ;;  %s2944_s16 = inlined_call_operand.vmem [shape: f32[2,8,32], index: 16, kind: output, shape index: {}]  }
   0x1   :  { %2950 = sst [smem:[#allocation10_spill]] %s2928_s0  ;;  %s2613_s23 = smov 0  }
   0x2   :  { %2951 = sst [smem:[#allocation11_spill]] %s2929_s1  ;;  %s2615_s24 = smov 0  }
   0x3   :  { %2952 = sst [smem:[#allocation12_spill]] %s2930_s2  ;;  %s2617_s25 = smov 0  }
   0x4   :  { %2953 = sst [smem:[#allocation13_spill]] %s2931_s3 }
   0x5   :  { %2954 = sst [smem:[#allocation14_spill]] %s2932_s4 }
   0x6   :  { %2955 = sst [smem:[#allocation15_spill]] %s2933_s5 }
   0x7   :  { %2956 = sst [smem:[#allocation16_spill]] %s2934_s6 }
   0x8   :  { %2957 = sst [smem:[#allocation17_spill]] %s2938_s10 }
   0x9   :  { %2958 = sst [smem:[#allocation18_spill]] %s2939_s11 }
   0xa   :  { %2959 = sst [smem:[#allocation19_spill]] %s2943_s15 }
   0xb   :  { %2960 = sst [smem:[#allocation20_spill]] %s2944_s16 }
   0xc LB: > { %2961 = sst [smem:[#allocation3_spill]] %s2498_s21  ;;  %s35_s26 = sadd.s32 1, %s2506_s23  ;;  %s2514_s25 = sphi %s2617_s25, %s26_s25   ;;  %s2510_s24 = sphi %s2615_s24, %s2994_s24   ;;  %s2506_s23 = sphi %s2613_s23, %s2993_s23   ;;  %s2502_s22 = sphi %s2611_s22, %s2992_s22   ;;  %s2498_s21 = sphi %s2609_s21, %s2991_s21  }
   0xd   : > { %2962 = sst [smem:[#allocation4_spill]] %s2506_s23  ;;  %s38_s27 = sadd.s32 1, %s2510_s24 }
   0xe   : > { %2963 = sst [smem:[#allocation5_spill]] %s2510_s24  ;;  %p36_p0 = scmp.ge.s32.totalorder %s35_s26, 2 }
   0xf   : > { %2964 = sst [smem:[#allocation6_spill]] %s2514_s25  ;;  %p2133_p1 = scmp.ge.s32.totalorder %s2514_s25, 1 }
  0x10   : > { %p596_p2 = scmp.lt.s32.totalorder %s2514_s25, 5  ;;  %s2996_s26 = smov (%p36_p0, %s35_s26), 0 }
  0x11   : > { %2965 = sst [smem:[#allocation7_spill]] %s2996_s26  ;;  %s2998_s27 = smov (!%p36_p0, %s38_s27), %s2510_s24 }
  0x12   : > { %p597_p3 = pnand %p2133_p1, %p596_p2  ;;  %p40_p4 = scmp.ge.s32.totalorder %s2998_s27, 2 }
  0x14   : > { %s3000_s27 = smov (%p40_p4, %s2998_s27), 0  ;;  %600 = sbr.rel (%p597_p3) target bundleno = 2798 (0xaee), region = 84 }
  0x15   : > { %2966 = sst [smem:[#allocation8_spill]] %s3000_s27 }
  0x1b   : > { %p697_p5 = scmp.lt.s32.totalorder %s2502_s22, 1  ;;  %p701_p6 = scmp.lt.s32.totalorder %s2498_s21, 1 }
  0x1c   : > { %s2967_s17 = sld [smem:[#allocation10_spill]]  ;;  %s2969_s2 = sld [smem:[#allocation12_spill]] }
  0x1d   : > { %s3002_s22 = smov (!%p697_p5, %s2502_s22), 1  ;;  %s2971_s4 = sld [smem:[#allocation14_spill]] }
  0x1e   : > { %s2643_s28 = scalar_select %p701_p6, %s2498_s21, 1 }
  0x1f   : > { %s2134_s29 = sshll.u32 %s3002_s22, 3  ;;  %s2972_s5 = sld [smem:[#allocation15_spill]] }
  0x20   : > { %s2386_s19 = smul.u32 48, %s2643_s28  ;;  %s2214_s27 = sshll.u32 %s2643_s28, 4 }
  0x21   : > { %s2387_s24 = smul.u32 3, %s2643_s28  ;;  %s2973_s6 = sld [smem:[#allocation16_spill]] }
  0x22   : > { %s700_s18 = scalar_lea.vmem %s2967_s17, %s2134_s29  ;;  %s2657_s1 = scalar_lea.vmem %s2969_s2, %s2386_s19 }
  0x23   : > { %2970 = sst [smem:[#allocation9_spill]] %s2657_s1  ;;  %s2662_s16 = scalar_lea.vmem %s2971_s4, %s2386_s19 }
  0x24   : > { %s2974_s10 = sld [smem:[#allocation17_spill]]  ;;  %s747_s25 = scalar_lea.vmem %s2941_s13, %s2643_s28 }
  0x25   : > { %s2667_s17 = scalar_lea.vmem %s2972_s5, %s2387_s24  ;;  %s750_s24 = scalar_lea.vmem %s2942_s14, %s2643_s28 }
  0x26   : > { %s2976_s30 = sld [smem:[#allocation19_spill]]  ;;  %s2977_s5 = sld [smem:[#allocation20_spill]] }
  0x27   : > { %s2673_s3 = scalar_lea.vmem %s2973_s6, %s2214_s27  ;;  %s2216_s6 = sshll.u32 %s2643_s28, 5 }
  0x28   : > { %s2704_s21 = scalar_lea.vmem %s2940_s12, %s2216_s6  ;;  %s2978_s15 = sld [smem:[#allocation3_spill]] }
  0x2a   : > { %s2690_s4 = scalar_lea.vmem %s2974_s10, %s2214_s27 }
  0x2c   : > { %s753_s10 = scalar_lea.vmem %s2976_s30, %s2643_s28  ;;  %s2717_s11 = scalar_lea.vmem %s2977_s5, %s2134_s29 }
  0x2e   : > { %p2144_p7 = scmp.ne.s32.totalorder %s2978_s15, 0 }
  0x2f   : > { %v763_v0 = vld [vmem:[%s700_s18] sm:$0xff] (!%p2144_p7)  ;;  %vm764_vm0 = vcmask (!%p2144_p7), 261120  }
  0x30   : > { %762 = sbr.rel (%p2144_p7) target bundleno = 55 (0x37), region = 88  ;;  %765 = vst.msk [vmem:[#allocation2] sm:$0xff] (!%p2144_p7), %vm764_vm0, %v763_v0 }
  0x37 PF: > { %s2979_s6 = sld [smem:[#allocation9_spill]]  ;;  %v2516_v2 = vmov 0.0   ;;  %vm2517_vm1 = vmmov 0   ;;  %v766_v4 = vld [vmem:[#allocation2] sm:$0xff]  ;;  %vm774_vm2 = vcmask 1046528   ;;  %vm799_vm3 = vcmask 261120   ;;  %s2983_s20 = scalar_lea.vmem %s2935_s7, %s2643_s28 }
  0x38   : > { %2262 = vmatprep.subr.bf16.mxu1 %v2516_v2  ;;  %2278 = vmatprep.subr.bf16.mxu0 %v2516_v2  ;;  %v772_v6 = vrot.slane %v766_v4, 1  ;;  %v786_v7 = vpack.c.bf16 %v766_v4, %v766_v4  ;;  %v768_v11 = vrot.slane %v766_v4, 7  ;;  %vm770_vm4 = vcmask 1040384   ;;  %v2442_v16 = vld [vmem:[%s2662_s16] sm:$0xff]   ;;  %v2443_v17 = vld [vmem:[%s2662_s16 + $0x10] sm:$0xff]   ;;  %v2444_v18 = vld [vmem:[%s2662_s16 + $0x8] sm:$0xff]  }
  0x39   : > { %2266 = vmatprep.mubr.msk.bf16.mxu1 %vm2517_vm1, %v2516_v2  ;;  %2282 = vmatprep.mubr.msk.bf16.mxu0 %vm2517_vm1, %v2516_v2  ;;  %v2445_v19 = vld [vmem:[%s2662_s16 + $0x18] sm:$0xff]   ;;  %s2980_s18 = sld [smem:[#allocation13_spill]]  ;;  %v2446_v37 = vld [vmem:[%s2662_s16 + $0x20] sm:$0xff]   ;;  %v2447_v39 = vld [vmem:[%s2662_s16 + $0x28] sm:$0xff]   ;;  %vm1170_vm5 = vcmask 64512   ;;  %s2518_s16 = smov 112  }
  0x3a   : > { %v775_v9 = vsel %vm774_vm2, %v772_v6, 0.0  ;;  %v771_v14 = vsel %vm770_vm4, 0.0, %v768_v11  ;;  %v2172_v40 = vld [vmem:[%s2667_s17 + $0x1] ss:$0 sm:$0xff]  ;;  %v2163_v41 = vld [vmem:[%s2667_s17] ss:$0 sm:$0xff] }
  0x3b   : > { %v903_v13 = vpack.c.bf16 %v775_v9, %v775_v9  ;;  %v780_v15 = vpack.c.bf16 %v771_v14, %v771_v14  ;;  %s2519_s23 = smov 120   ;;  %v2181_v54 = vld [vmem:[%s2667_s17 + $0x2] ss:$0 sm:$0xff]  ;;  %vm1234_vm6 = vcmask 1043456   ;;  %s2520_s1 = smov 104   ;;  %vm1630_vm7 = vcmask 130048  }
  0x3c   : > { %s2982_s19 = sld [smem:[#allocation11_spill]]  ;;  %s2521_s22 = smov 8   ;;  %vm1632_vm8 = vcmask 195584   ;;  %vm1840_vm9 = vcmask 523264  }
  0x3d   : > { %v2436_v1 = vld [vmem:[%s2979_s6 + $0x10] sm:$0xff]   ;;  %v2437_v3 = vld [vmem:[%s2979_s6 + $0x18] sm:$0xff]   ;;  %v2438_v5 = vld [vmem:[%s2979_s6 + $0x20] sm:$0xff]   ;;  %s2522_s27 = smov 16   ;;  %s2523_s0 = smov 24  }
  0x3e   : > { %2263 = vmatpush3.bf16.msra.mxu1 %v2436_v1  ;;  %2279 = vmatpush3.bf16.msra.mxu0 %v2438_v5  ;;  %v2440_v8 = vld [vmem:[%s2979_s6 + $0x28] sm:$0xff]   ;;  %v2439_v10 = vld [vmem:[%s2979_s6] sm:$0xff]  }
  0x3f   : > { %2264 = vmatprep.subr.bf16.mxu1 %v2516_v2  ;;  %2280 = vmatprep.subr.bf16.mxu0 %v2516_v2  ;;  %v2441_v12 = vld [vmem:[%s2979_s6 + $0x8] sm:$0xff]   ;;  %s2981_s30 = scalar_lea.vmem %s2980_s18, %s2643_s28  ;;  %s2984_s6 = scalar_lea.vmem %s2936_s8, %s2643_s28 }
  0x40   : > { %v2162_v31 = vld [vmem:[%s2981_s30] ss:$0 sm:$0xff]  ;;  %s2985_s18 = scalar_lea.vmem %s2937_s9, %s2643_s28 }
  0x42   : > { %2265 = vmatpush3.bf16.msra.mxu1 %v2437_v3  ;;  %2281 = vmatpush3.bf16.msra.mxu0 %v2440_v8 }
  0x43   : > { %2270 = vmatprep.subr.bf16.mxu1 %v2516_v2  ;;  %2294 = vmatprep.subr.bf16.mxu0 %v2516_v2 }
  0x45   : > { %2267 = vmatmul.mubr.msk.bf16.vlgmr.msra.gmra.mrb[0].mxu1 %vm799_vm3, %v786_v7  ;;  %2283 = vmatmul.mubr.msk.bf16.vlgmr.msra.gmra.mrb[0].mxu0 %vm799_vm3, %v903_v13 }
  0x46   : > { %2271 = vmatpush3.bf16.msra.mxu1 %v2439_v10  ;;  %2274 = vmatprep.mubr.msk.bf16.mxu1 %vm2517_vm1, %v2516_v2  ;;  %v969_v10 = vld [vmem:[%s2982_s19] sm:$0xff] }
  0x47   : > { %2272 = vmatprep.subr.bf16.mxu1 %v2516_v2  ;;  %2298 = vmatprep.mubr.msk.bf16.mxu0 %vm2517_vm1, %v2516_v2 }
  0x48   : > { %2295 = vmatpush3.bf16.msra.mxu0 %v2443_v17 }
  0x49   : > { %2296 = vmatprep.subr.bf16.mxu0 %v2516_v2 }
  0x4a   : > { %2273 = vmatpush3.bf16.msra.mxu1 %v2441_v12 }
  0x4b   : > { %2286 = vmatprep.subr.bf16.mxu1 %v2516_v2 }
  0x4c   : > { %2297 = vmatpush3.bf16.msra.mxu0 %v2445_v19 }
  0x4d   : > { %2275 = vmatmul.mubr.msk.bf16.vlgmr.msra.gmra.mrb[4].mxu1 %vm799_vm3, %v780_v15  ;;  %2310 = vmatprep.subr.bf16.mxu0 %v2516_v2 }
  0x4e   : > { %2290 = vmatprep.mubr.msk.bf16.mxu1 %vm2517_vm1, %v2516_v2  ;;  %2287 = vmatpush3.bf16.msra.mxu1 %v2442_v16 }
  0x4f   : > { %2288 = vmatprep.subr.bf16.mxu1 %v2516_v2 }
  0x52   : > { %2289 = vmatpush3.bf16.msra.mxu1 %v2444_v18 }
  0x53   : > { %2302 = vmatprep.subr.bf16.mxu1 %v2516_v2 }
 0x118   : > { %v837_v20 = vpop.f32.mrb[0].mxu1  ;;  %v953_v24 = vpop.f32.mrb[0].mxu0 }
 0x119   : > { %v2268_v21 = vpop.f32.mrb[1].mxu1  ;;  %v2284_v25 = vpop.f32.mrb[1].mxu0 }
 0x11a   : > { %v840_v22 = vpop.f32.mrb[2].mxu1  ;;  %v956_v26 = vpop.f32.mrb[2].mxu0 }
 0x11b   : > { %v2269_v23 = vpop.f32.mrb[3].mxu1  ;;  %v2285_v27 = vpop.f32.mrb[3].mxu0 }
 0x120   : > { %v892_v28 = vpop.f32.mrb[4].mxu1 }
 0x121   : > { %v893_v29 = vadd.f32 %v892_v28, %v837_v20  ;;  %v2276_v30 = vpop.f32.mrb[5].mxu1 }
 0x122   : > { %v895_v32 = vpop.f32.mrb[6].mxu1 }
 0x123   : > { %v959_v33 = vadd.f32 %v953_v24, %v893_v29  ;;  %v2277_v34 = vpop.f32.mrb[7].mxu1 }
 0x125   : > { %v2760_v35 = vadd.f32 %v2162_v31, %v959_v33 }
 0x127   : > { %v2763_v36 = vadd.f32 %v2760_v35, %v766_v4 }
 0x129   : > { %v974_v38 = vpack.c.bf16 %v2763_v36, %v2763_v36 }
 0x12b   : > { %2291 = vmatmul.mubr.msk.bf16.vlgmr.msra.gmra.mrb[8].mxu1 %vm799_vm3, %v974_v38  ;;  %2299 = vmatmul.mubr.msk.bf16.vlgmr.msra.gmra.mrb[4].mxu0 %vm799_vm3, %v974_v38 }
 0x12c   : > { %2303 = vmatpush3.bf16.msra.mxu1 %v2446_v37  ;;  %2306 = vmatprep.mubr.msk.bf16.mxu1 %vm2517_vm1, %v2516_v2 }
 0x12d   : > { %2304 = vmatprep.subr.bf16.mxu1 %v2516_v2  ;;  %2312 = vmatprep.mubr.msk.bf16.mxu0 %vm2517_vm1, %v2516_v2 }
 0x130   : > { %2305 = vmatpush3.bf16.msra.mxu1 %v2447_v39 }
 0x131   : > { %2316 = vmatprep.subr.bf16.mxu1 %v2516_v2 }
 0x133   : > { %2307 = vmatmul.mubr.msk.bf16.vlgmr.msra.gmra.mrb[12].mxu1 %vm799_vm3, %v974_v38 }
 0x134   : > { %2318 = vmatprep.mubr.msk.bf16.mxu1 %vm2517_vm1, %v2516_v2 }
 0x1fe   : > { %v1031_v42 = vpop.f32.mrb[8].mxu1  ;;  %v1096_v43 = vpop.f32.mrb[4].mxu0 }
 0x1ff   : > { %v1097_v44 = vadd.f32 %v2172_v40, %v1096_v43  ;;  %v2292_v45 = vpop.f32.mrb[9].mxu1  ;;  %v2300_v46 = vpop.f32.mrb[5].mxu0  ;;  %v1032_v49 = vadd.f32 %v2163_v41, %v1031_v42 }
 0x200   : > { %v1034_v47 = vpop.f32.mrb[10].mxu1  ;;  %v1099_v48 = vpop.f32.mrb[6].mxu0 }
 0x201   : > { %v1168_v50 = vpack.c.bf16 %v1097_v44, %v1097_v44  ;;  %v2293_v51 = vpop.f32.mrb[11].mxu1  ;;  %v2301_v52 = vpop.f32.mrb[7].mxu0  ;;  %v1167_v55 = vpack.c.bf16 %v1032_v49, %v1032_v49 }
 0x203   : > { %1395 = vrot.lane.b32.xlu1 %v1168_v50, %s2518_s16  ;;  %1282 = vrot.lane.b32.xlu0 %v1168_v50, %s2519_s23  ;;  %v1175_v53 = vsel %vm1170_vm5, %v1168_v50, 0 }
 0x204   : > { %2311 = vmatpush3.bf16.xpose.msra.mxu0 %v1175_v53 }
 0x205   : > { %2322 = vmatprep.subr.bf16.mxu0 %v2516_v2 }
 0x206   : > { %v1161_v56 = vpop.f32.mrb[12].mxu1 }
 0x207   : > { %v1162_v57 = vadd.f32 %v2181_v54, %v1161_v56  ;;  %1393 = vrot.lane.b32.xlu1 %v1167_v55, %s2518_s16  ;;  %1279 = vrot.lane.b32.xlu0 %v1167_v55, %s2519_s23  ;;  %v2308_v58 = vpop.f32.mrb[13].mxu1 }
 0x208   : > { %v1164_v59 = vpop.f32.mrb[14].mxu1 }
 0x209   : > { %v2789_v60 = vpack.c.bf16 %v1162_v57, %v1162_v57  ;;  %v2309_v61 = vpop.f32.mrb[15].mxu1 }
 0x20b   : > { %1505 = vrot.lane.b32.xlu1 %v1167_v55, %s2520_s1  ;;  %1507 = vrot.lane.b32.xlu0 %v1168_v50, %s2520_s1  ;;  %v1236_v62 = vsel %vm1234_vm6, %v2789_v60, 0 }
 0x20c   : > { %2313 = vmatmul.mubr.msk.bf16.vlgmr.msra.gmra.mrb[8].mxu0 %vm1170_vm5, %v1167_v55  ;;  %2317 = vmatpush3.bf16.msra.mxu1 %v1236_v62 }
 0x20d   : > { %2324 = vmatprep.mubr.msk.bf16.mxu0 %vm2517_vm1, %v2516_v2  ;;  %2328 = vmatprep.subr.bf16.mxu1 %v2516_v2 }
 0x275   : > { %v1283_v63 = vpop.permute.xlu0 %1282  ;;  %v1396_v1 = vpop.permute.xlu1 %1395 }
 0x276   : > { %v1288_v0 = vsel %vm1170_vm5, %v1283_v63, 0  ;;  %v1401_v4 = vsel %vm1170_vm5, %v1396_v1, 0 }
 0x277   : > { %2323 = vmatpush3.bf16.xpose.msra.mxu0 %v1288_v0 }
 0x278   : > { %2334 = vmatprep.subr.bf16.mxu0 %v2516_v2 }
 0x279   : > { %v1280_v3 = vpop.permute.xlu0 %1279  ;;  %v1394_v6 = vpop.permute.xlu1 %1393 }
 0x27d   : > { %v1508_v5 = vpop.permute.xlu0 %1507  ;;  %v1506_v8 = vpop.permute.xlu1 %1505 }
 0x27e   : > { %2325 = vmatmul.mubr.msk.bf16.vlgmr.msra.gmra.mrb[12].mxu0 %vm1170_vm5, %v1280_v3  ;;  %v1513_v7 = vsel %vm1170_vm5, %v1508_v5, 0 }
 0x27f   : > { %2335 = vmatpush3.bf16.xpose.msra.mxu0 %v1401_v4  ;;  %2336 = vmatprep.mubr.msk.bf16.mxu0 %vm2517_vm1, %v2516_v2 }
 0x280   : > { %2346 = vmatprep.subr.bf16.mxu0 %v2516_v2 }
 0x286   : > { %2337 = vmatmul.mubr.msk.bf16.vlgmr.msra.gmra.mrb[16].mxu0 %vm1170_vm5, %v1394_v6 }
 0x287   : > { %2347 = vmatpush3.bf16.xpose.msra.mxu0 %v1513_v7  ;;  %2348 = vmatprep.mubr.msk.bf16.mxu0 %vm2517_vm1, %v2516_v2 }
 0x288   : > { %2358 = vmatprep.subr.bf16.mxu0 %v2516_v2 }
 0x28e   : > { %2349 = vmatmul.mubr.msk.bf16.vlgmr.msra.gmra.mrb[20].mxu0 %vm1170_vm5, %v1506_v8 }
 0x28f   : > { %2362 = vmatprep.mubr.msk.bf16.mxu0 %vm2517_vm1, %v2516_v2 }
 0x2df   : > { %v1211_v9 = vpop.f32.mrb[8].mxu0 }
 0x2e0   : > { %v1217_v11 = vmul.f32 0.35355338, %v1211_v9  ;;  %v2314_v12 = vpop.f32.mrb[9].mxu0 }
 0x2e1   : > { %v1214_v13 = vpop.f32.mrb[10].mxu0 }
 0x2e2   : > { %v2315_v14 = vpop.f32.mrb[11].mxu0  ;;  %v1218_v15 = vadd.f32 %v1217_v11, %v969_v10 }
 0x2e4   : > { %v1219_v16 = vsel %vm1170_vm5, %v1218_v15, -inf }
 0x2e5   : > { %1220 = vmax.xlane.f32.xlu0 %v1219_v16 }
 0x351   : > { %v1324_v17 = vpop.f32.mrb[12].mxu0 }
 0x352   : > { %v1330_v18 = vmul.f32 0.35355338, %v1324_v17  ;;  %v2326_v19 = vpop.f32.mrb[13].mxu0 }
 0x353   : > { %v1327_v20 = vpop.f32.mrb[14].mxu0 }
 0x354   : > { %v2327_v21 = vpop.f32.mrb[15].mxu0  ;;  %v1331_v22 = vadd.f32 %v1330_v18, %v969_v10 }
 0x356   : > { %v1332_v23 = vsel %vm1170_vm5, %v1331_v22, -inf }
 0x357   : > { %1333 = vmax.xlane.f32.xlu1 %v1332_v23  ;;  %v2448_v23 = vld [vmem:[%s2673_s3] sm:$0xff]  }
 0x358   : > { %2359 = vmatpush3.bf16.msra.mxu0 %v2448_v23 }
 0x359   : > { %v1437_v24 = vpop.f32.mrb[16].mxu0  ;;  %2360 = vmatprep.subr.bf16.mxu0 %v2516_v2 }
 0x35a   : > { %v1443_v25 = vmul.f32 0.35355338, %v1437_v24  ;;  %v2338_v26 = vpop.f32.mrb[17].mxu0 }
 0x35b   : > { %v1440_v27 = vpop.f32.mrb[18].mxu0 }
 0x35c   : > { %v2339_v28 = vpop.f32.mrb[19].mxu0  ;;  %v1444_v29 = vadd.f32 %v1443_v25, %v969_v10 }
 0x35d   : > { %v2449_v28 = vld [vmem:[%s2673_s3 + $0x8] sm:$0xff]  }
 0x35e   : > { %v1445_v30 = vsel %vm1170_vm5, %v1444_v29, -inf  ;;  %2361 = vmatpush3.bf16.msra.mxu0 %v2449_v28 }
 0x35f   : > { %1446 = vmax.xlane.f32.xlu0 %v1445_v30  ;;  %2374 = vmatprep.subr.bf16.mxu0 %v2516_v2 }
 0x361   : > { %v1549_v31 = vpop.f32.mrb[20].mxu0 }
 0x362   : > { %v1555_v32 = vmul.f32 0.35355338, %v1549_v31  ;;  %v2350_v33 = vpop.f32.mrb[21].mxu0 }
 0x363   : > { %v1552_v34 = vpop.f32.mrb[22].mxu0 }
 0x364   : > { %v2351_v37 = vpop.f32.mrb[23].mxu0  ;;  %v1556_v38 = vadd.f32 %v1555_v32, %v969_v10 }
 0x366   : > { %v1557_v39 = vsel %vm1170_vm5, %v1556_v38, -inf }
 0x367   : > { %1558 = vmax.xlane.f32.xlu0 %v1557_v39 }
 0x372   : > { %v1221_v40 = vpop.xlane.xlu0 %1220 }
 0x373   : > { %v1222_v41 = vsub.f32 %v1218_v15, %v1221_v40 }
 0x375   : > { %v1223_v42 = vmul.f32 1.442695, %v1222_v41 }
 0x377   : > { %2456 = vpow2.f32 %v1223_v42 }
 0x381   : > { %v2457_v43 = vpop.eup %2456 }
 0x382   : > { %v1225_v44 = vsel %vm1170_vm5, %v2457_v43, 0.0 }
 0x383   : > { %1226 = vadd.xlane.f32.xlu1 %v1225_v44 }
 0x394   : > { %1345 = vrot.lane.b32.xlu1 %v2789_v60, %s2519_s23  ;;  %s2986_s23 = sld [smem:[#allocation18_spill]] }
 0x3e4   : > { %v1334_v45 = vpop.xlane.xlu1 %1333 }
 0x3e5   : > { %v1335_v46 = vsub.f32 %v1331_v22, %v1334_v45 }
 0x3e7   : > { %v1336_v47 = vmul.f32 1.442695, %v1335_v46  ;;  %v2193_v46 = vld [vmem:[%s2983_s20] ss:$0 sm:$0xff] }
 0x3e9   : > { %2458 = vpow2.f32 %v1336_v47 }
 0x3ec   : > { %v1447_v48 = vpop.xlane.xlu0 %1446 }
 0x3ed   : > { %v1448_v49 = vsub.f32 %v1444_v29, %v1447_v48 }
 0x3ef   : > { %v1449_v50 = vmul.f32 1.442695, %v1448_v49 }
 0x3f1   : > { %2460 = vpow2.f32 %v1449_v50 }
 0x3f3   : > { %v2459_v51 = vpop.eup %2458 }
 0x3f4   : > { %v1559_v52 = vpop.xlane.xlu0 %1558  ;;  %v1338_v53 = vsel %vm1170_vm5, %v2459_v51, 0.0 }
 0x3f5   : > { %v1560_v54 = vsub.f32 %v1556_v38, %v1559_v52  ;;  %1339 = vadd.xlane.f32.xlu0 %v1338_v53 }
 0x3f7   : > { %v1561_v55 = vmul.f32 1.442695, %v1560_v54 }
 0x3f9   : > { %2462 = vpow2.f32 %v1561_v55 }
 0x3fb   : > { %v2461_v56 = vpop.eup %2460 }
 0x3fc   : > { %v1451_v57 = vsel %vm1170_vm5, %v2461_v56, 0.0 }
 0x3fd   : > { %1452 = vadd.xlane.f32.xlu1 %v1451_v57 }
 0x403   : > { %v2463_v58 = vpop.eup %2462 }
 0x404   : > { %v1563_v59 = vsel %vm1170_vm5, %v2463_v58, 0.0 }
 0x405   : > { %1564 = vadd.xlane.f32.xlu0 %v1563_v59  ;;  %v2450_v59 = vld [vmem:[%s2690_s4] sm:$0xff]  }
 0x40e   : > { %1569 = vrot.lane.b32.xlu1 %v2789_v60, %s2520_s1  ;;  %s2987_s1 = scalar_lea.vmem %s2986_s23, %s2643_s28 }
 0x410   : > { %v1227_v61 = vpop.xlane.xlu1 %1226 }
 0x411   : > { %2464 = vrcp.f32 %v1227_v61  ;;  %v2451_v61 = vld [vmem:[%s2690_s4 + $0x8] sm:$0xff]  }
 0x414   : > { %v1346_v0 = vpop.permute.xlu1 %1345 }
 0x415   : > { %v1351_v3 = vsel %vm1234_vm6, %v1346_v0, 0 }
 0x41b   : > { %v2465_v62 = vpop.eup %2464  ;;  %1457 = vrot.lane.b32.xlu0 %v2789_v60, %s2518_s16 }
 0x41c   : > { %v1229_v63 = vmul.f32 %v2465_v62, %v2457_v43  ;;  %v2453_v62 = vld [vmem:[%s2704_s21 + $0x8] sm:$0xff]  }
 0x41e   : > { %v1230_v1 = vpack.c.bf16 %v1229_v63, %v1229_v63 }
 0x420   : > { %2319 = vmatmul.mubr.msk.bf16.vlgmr.msra.gmra.mrb[16].mxu1 %vm1170_vm5, %v1230_v1 }
 0x421   : > { %2329 = vmatpush3.bf16.msra.mxu1 %v1351_v3  ;;  %2330 = vmatprep.mubr.msk.bf16.mxu1 %vm2517_vm1, %v2516_v2 }
 0x422   : > { %2340 = vmatprep.subr.bf16.mxu1 %v2516_v2 }
 0x482   : > { %v1340_v4 = vpop.xlane.xlu0 %1339 }
 0x483   : > { %2466 = vrcp.f32 %v1340_v4  ;;  %v2197_v4 = vld [vmem:[%s2984_s6] ss:$0 sm:$0xff] }
 0x48a   : > { %v1453_v5 = vpop.xlane.xlu1 %1452 }
 0x48b   : > { %2468 = vrcp.f32 %v1453_v5 }
 0x48d   : > { %v2467_v6 = vpop.eup %2466 }
 0x48e   : > { %v1342_v7 = vmul.f32 %v2467_v6, %v2459_v51  ;;  %v1570_v13 = vpop.permute.xlu1 %1569  ;;  %v2198_v6 = vld [vmem:[%s2985_s18] ss:$0 sm:$0xff] }
 0x48f   : > { %v1575_v15 = vsel %vm1234_vm6, %v1570_v13, 0 }
 0x490   : > { %v1343_v60 = vpack.c.bf16 %v1342_v7, %v1342_v7 }
 0x492   : > { %v1565_v8 = vpop.xlane.xlu0 %1564  ;;  %2331 = vmatmul.mubr.msk.bf16.vlgmr.msra.gmra.mrb[20].mxu1 %vm1170_vm5, %v1343_v60 }
 0x493   : > { %2470 = vrcp.f32 %v1565_v8  ;;  %2342 = vmatprep.mubr.msk.bf16.mxu1 %vm2517_vm1, %v2516_v2 }
 0x495   : > { %v2469_v9 = vpop.eup %2468 }
 0x496   : > { %v1455_v10 = vmul.f32 %v2469_v9, %v2461_v56  ;;  %v1458_v11 = vpop.permute.xlu0 %1457  ;;  %v2454_v9 = vld [vmem:[%s2704_s21 + $0x10] sm:$0xff]  }
 0x497   : > { %v1463_v12 = vsel %vm1234_vm6, %v1458_v11, 0  ;;  %v2199_v11 = vld [vmem:[%s2987_s1] ss:$0 sm:$0xff] }
 0x498   : > { %2341 = vmatpush3.bf16.msra.mxu1 %v1463_v12  ;;  %v1456_v14 = vpack.c.bf16 %v1455_v10, %v1455_v10  ;;  %v2455_v10 = vld [vmem:[%s2704_s21 + $0x18] sm:$0xff]  }
 0x499   : > { %2352 = vmatprep.subr.bf16.mxu1 %v2516_v2 }
 0x49b   : > { %2343 = vmatmul.mubr.msk.bf16.vlgmr.msra.gmra.mrb[24].mxu1 %vm1170_vm5, %v1456_v14 }
 0x49c   : > { %2353 = vmatpush3.bf16.msra.mxu1 %v1575_v15  ;;  %2354 = vmatprep.mubr.msk.bf16.mxu1 %vm2517_vm1, %v2516_v2 }
 0x49d   : > { %v2471_v16 = vpop.eup %2470  ;;  %2366 = vmatprep.subr.bf16.mxu1 %v2516_v2 }
 0x49e   : > { %v1567_v17 = vmul.f32 %v2471_v16, %v2463_v58 }
 0x4a0   : > { %v1568_v18 = vpack.c.bf16 %v1567_v17, %v1567_v17 }
 0x4a3   : > { %2355 = vmatmul.mubr.msk.bf16.vlgmr.msra.gmra.mrb[28].mxu1 %vm1170_vm5, %v1568_v18 }
 0x4a4   : > { %2370 = vmatprep.mubr.msk.bf16.mxu1 %vm2517_vm1, %v2516_v2  ;;  %2367 = vmatpush3.bf16.msra.mxu1 %v2450_v59 }
 0x4a5   : > { %2368 = vmatprep.subr.bf16.mxu1 %v2516_v2 }
 0x4a8   : > { %2369 = vmatpush3.bf16.msra.mxu1 %v2451_v61 }
 0x4f3   : > { %v1272_v19 = vpop.f32.mrb[16].mxu1 }
 0x4f4   : > { %v2320_v20 = vpop.f32.mrb[17].mxu1 }
 0x4f5   : > { %v1275_v21 = vpop.f32.mrb[18].mxu1 }
 0x4f6   : > { %v2321_v22 = vpop.f32.mrb[19].mxu1 }
 0x565   : > { %v1387_v24 = vpop.f32.mrb[20].mxu1 }
 0x566   : > { %1618 = vrot.lane.b32.xlu1 %v1387_v24, %s2521_s22  ;;  %v2332_v25 = vpop.f32.mrb[21].mxu1 }
 0x567   : > { %v1390_v26 = vpop.f32.mrb[22].mxu1 }
 0x568   : > { %v2333_v27 = vpop.f32.mrb[23].mxu1 }
 0x56e   : > { %v1499_v29 = vpop.f32.mrb[24].mxu1 }
 0x56f   : > { %1622 = vrot.lane.b32.xlu0 %v1499_v29, %s2522_s27  ;;  %v2344_v30 = vpop.f32.mrb[25].mxu1 }
 0x570   : > { %v1502_v31 = vpop.f32.mrb[26].mxu1 }
 0x571   : > { %v2345_v32 = vpop.f32.mrb[27].mxu1 }
 0x576   : > { %v1611_v33 = vpop.f32.mrb[28].mxu1 }
 0x577   : > { %1626 = vrot.lane.b32.xlu1 %v1611_v33, %s2523_s0  ;;  %v2356_v34 = vpop.f32.mrb[29].mxu1  ;;  %s2989_s0 = sld [smem:[#allocation3_spill]] }
 0x578   : > { %v1614_v37 = vpop.f32.mrb[30].mxu1 }
 0x579   : > { %v2357_v38 = vpop.f32.mrb[31].mxu1  ;;  %v2209_v37 = vld [vmem:[%s750_s24] ss:$0 sm:$0xff] }
 0x57d   : > { %p2211_p8 = scmp.ne.s32.totalorder %s2989_s0, 1 }
 0x5d8   : > { %v1619_v39 = vpop.permute.xlu1 %1618 }
 0x5d9   : > { %v1629_v41 = vsel %vm1170_vm5, %v1272_v19, %v1619_v39  ;;  %v2210_v39 = vld [vmem:[%s753_s10] ss:$0 sm:$0xff] }
 0x5e1   : > { %v1623_v40 = vpop.permute.xlu0 %1622 }
 0x5e2   : > { %v1631_v42 = vsel %vm1630_vm7, %v1629_v41, %v1623_v40 }
 0x5e9   : > { %v1627_v43 = vpop.permute.xlu1 %1626 }
 0x5ea   : > { %v1633_v44 = vsel %vm1632_vm8, %v1631_v42, %v1627_v43 }
 0x5eb   : > { %v1638_v45 = vpack.c.bf16 %v1633_v44, %v1633_v44 }
 0x5ed   : > { %2363 = vmatmul.mubr.msk.bf16.vlgmr.msra.gmra.mrb[24].mxu0 %vm799_vm3, %v1638_v45 }
 0x5ee   : > { %2382 = vmatprep.mubr.msk.bf16.mxu0 %vm2517_vm1, %v2516_v2 }
 0x6c0   : > { %v1695_v47 = vpop.f32.mrb[24].mxu0 }
 0x6c1   : > { %v1696_v48 = vadd.f32 %v2193_v46, %v1695_v47  ;;  %v2364_v49 = vpop.f32.mrb[25].mxu0 }
 0x6c2   : > { %v1698_v50 = vpop.f32.mrb[26].mxu0 }
 0x6c3   : > { %v2365_v51 = vpop.f32.mrb[27].mxu0  ;;  %v1701_v52 = vadd.f32 %v1696_v48, %v2763_v36  ;;  %v2452_v36 = vld [vmem:[%s2704_s21] sm:$0xff]  }
 0x6c4   : > { %2375 = vmatpush3.bf16.msra.mxu0 %v2452_v36 }
 0x6c5   : > { %v1704_v53 = vsel %vm799_vm3, %v1701_v52, 0.0  ;;  %2376 = vmatprep.subr.bf16.mxu0 %v2516_v2 }
 0x6c6   : > { %1705 = vadd.xlane.f32.xlu0 %v1704_v53 }
 0x6c8   : > { %2377 = vmatpush3.bf16.msra.mxu0 %v2453_v62 }
 0x6c9   : > { %2378 = vmatprep.subr.bf16.mxu0 %v2516_v2 }
 0x6cc   : > { %2379 = vmatpush3.bf16.msra.mxu0 %v2454_v9 }
 0x6cd   : > { %2380 = vmatprep.subr.bf16.mxu0 %v2516_v2  ;;  %v2203_v2 = vld [vmem:[%s747_s25] ss:$0 sm:$0xff] }
 0x6d0   : > { %2381 = vmatpush3.bf16.msra.mxu0 %v2455_v10 }
 0x753   : > { %v1706_v54 = vpop.xlane.xlu0 %1705 }
 0x754   : > { %v1708_v55 = vmul.f32 0.03125, %v1706_v54 }
 0x756   : > { %v1709_v56 = vsub.f32 %v1701_v52, %v1708_v55 }
 0x758   : > { %v1710_v57 = vmul.f32 %v1709_v56, %v1709_v56 }
 0x75a   : > { %v1711_v58 = vsel %vm799_vm3, %v1710_v57, 0.0 }
 0x75b   : > { %1712 = vadd.xlane.f32.xlu1 %v1711_v58 }
 0x7e8   : > { %v1713_v63 = vpop.xlane.xlu1 %1712 }
 0x7e9   : > { %v1714_v0 = vmul.f32 0.03125, %v1713_v63 }
 0x7eb   : > { %v1715_v1 = vadd.f32 1e-05, %v1714_v0 }
 0x7ed   : > { %2472 = vrsqrt.f32 %v1715_v1 }
 0x7f7   : > { %v2473_v3 = vpop.eup %2472 }
 0x7f8   : > { %v1717_v5 = vmul.f32 %v2473_v3, %v1709_v56 }
 0x7fa   : > { %v1724_v7 = vmul.f32 %v2197_v4, %v1717_v5 }
 0x7fc   : > { %v1731_v60 = vadd.f32 %v2198_v6, %v1724_v7 }
 0x7fe   : > { %v1736_v8 = vpack.c.bf16 %v1731_v60, %v1731_v60 }
 0x800   : > { %2371 = vmatmul.mubr.msk.bf16.vlgmr.msra.gmra.mrb[32].mxu1 %vm799_vm3, %v1736_v8 }
 0x8d3   : > { %v1793_v12 = vpop.f32.mrb[32].mxu1 }
 0x8d4   : > { %v1794_v13 = vadd.f32 %v2199_v11, %v1793_v12  ;;  %v2372_v14 = vpop.f32.mrb[33].mxu1 }
 0x8d5   : > { %v1796_v15 = vpop.f32.mrb[34].mxu1 }
 0x8d6   : > { %v1799_v16 = vmax.f32 %v1794_v13, 0.0  ;;  %v2373_v17 = vpop.f32.mrb[35].mxu1 }
 0x8d8   : > { %v1808_v18 = vpack.c.bf16 %v1799_v16, %v1799_v16 }
 0x8da   : > { %2383 = vmatmul.mubr.msk.bf16.vlgmr.msra.gmra.mrb[28].mxu0 %vm1840_vm9, %v1808_v18 }
 0x9ad   : > { %v1878_v19 = vpop.f32.mrb[28].mxu0 }
 0x9ae   : > { %v1879_v20 = vadd.f32 %v2203_v2, %v1878_v19  ;;  %v2384_v21 = vpop.f32.mrb[29].mxu0 }
 0x9af   : > { %v1881_v22 = vpop.f32.mrb[30].mxu0 }
 0x9b0   : > { %v2385_v23 = vpop.f32.mrb[31].mxu0  ;;  %v1884_v24 = vadd.f32 %v1879_v20, %v1731_v60 }
 0x9b2   : > { %v1887_v25 = vsel %vm799_vm3, %v1884_v24, 0.0 }
 0x9b3   : > { %1888 = vadd.xlane.f32.xlu0 %v1887_v25 }
 0xa40   : > { %v1889_v26 = vpop.xlane.xlu0 %1888 }
 0xa41   : > { %v1890_v27 = vmul.f32 0.03125, %v1889_v26 }
 0xa43   : > { %v1891_v28 = vsub.f32 %v1884_v24, %v1890_v27 }
 0xa45   : > { %v1892_v29 = vmul.f32 %v1891_v28, %v1891_v28 }
 0xa47   : > { %v1893_v30 = vsel %vm799_vm3, %v1892_v29, 0.0 }
 0xa48   : > { %1894 = vadd.xlane.f32.xlu0 %v1893_v30 }
 0xad5   : > { %v1895_v31 = vpop.xlane.xlu0 %1894 }
 0xad6   : > { %v1896_v32 = vmul.f32 0.03125, %v1895_v31 }
 0xad8   : > { %v1897_v33 = vadd.f32 1e-05, %v1896_v32 }
 0xada   : > { %2474 = vrsqrt.f32 %v1897_v33 }
 0xae4   : > { %v2475_v34 = vpop.eup %2474 }
 0xae5   : > { %v1899_v38 = vmul.f32 %v2475_v34, %v1891_v28  ;;  %1918 = sbr.rel (%p2211_p8) target bundleno = 2798 (0xaee), region = 92 }
 0xae7   : > { %v1906_v40 = vmul.f32 %v2209_v37, %v1899_v38 }
 0xae9   : > { %v1913_v41 = vadd.f32 %v2210_v39, %v1906_v40 }
 0xaeb   : > { %1914 = vst.msk [vmem:[#allocation2] sm:$0xff] %vm799_vm3, %v1913_v41  ;;  %v1919_v42 = vadd.f32 (!%p2211_p8), %v1913_v41, %v2760_v35 }
 0xaed   : > { %1920 = vst.msk [vmem:[%s2717_s11] sm:$0xff] %vm799_vm3, %v1919_v42 }
 0xaee PF: > { %s2990_s24 = sld [smem:[#allocation6_spill]]  ;;  %s2991_s21 = sld [smem:[#allocation4_spill]] }
 0xaef   : > { %s2992_s22 = sld [smem:[#allocation5_spill]]  ;;  %s2993_s23 = sld [smem:[#allocation7_spill]] }
 0xaf4   : > { %s26_s25 = sadd.s32 1, %s2990_s24   ;;  %s2994_s24 = sld [smem:[#allocation8_spill]] }
 0xaf5   : > { %p23_p9 = scmp.ge.s32.totalorder %s26_s25, 6  }
 0xaf7   :  { %25 = sbr.rel (!%p23_p9) target bundleno = 12 (0xc), region = 170 }

</bundles_post_ra>
